<compile_context>
chip_gen: v6e
topology: v6e:2x2x1
jax: 0.10.0
libtpu: 0.0.40
codegen_flags: <defaults>
</compile_context>

<pallas_src>
import math

import jax
import jax.numpy as jnp
import numpy as np
from jax.experimental import pallas as pl
from jax.experimental.pallas import tpu as pltpu

_LOAD = 0.001 / math.sqrt(2.0)


def _recip(x):
    """Approximate reciprocal on the EUP + one Newton step (~1e-7 rel. error)."""
    r = pl.reciprocal(x, approx=True)
    return r * (2.0 - x * r)


def _round_up(x, m):
    return -(-x // m) * m


def _pair_groups(C, max_parts=36):
    """Split the a<=b Hermitian pair list into groups bounded by accumulator count."""
    pairs = [(a, b) for a in range(C) for b in range(a, C)]
    groups, cur, n = [], [], 0
    for p in pairs:
        parts = 1 if p[0] == p[1] else 2          # diag is purely real
        if cur and n + parts > max_parts:
            groups.append(cur)
            cur, n = [], 0
        cur.append(p)
        n += parts
    if cur:
        groups.append(cur)
    return groups


def _step_block_bytes(C, Tp, L):
    """Single-buffered per-grid-step block footprint (v + y + out + d), f32."""
    v = 2 * C * Tp * L * 4
    y = v
    o = 2 * Tp * L * 4
    d = 2 * C * L * 4
    return v + y + o + d


def _make_mvdr_kernel(C, T_true, Tp, L, tchunk, pair_groups):
    inv_T = 1.0 / float(T_true)
    n_chunks = Tp // tchunk

    def kernel(v_ref, y_ref, d_ref, o_ref):
        # v_ref, y_ref: (1, 2, C, Tp, L)   d_ref: (1, 2, C, L)   o_ref: (1, 2, Tp, L)

        # ---- spatial covariance: T-chunked accumulation (Hermitian, a<=b) ---------
        Ar = [[None] * C for _ in range(C)]
        Ai = [[None] * C for _ in range(C)]
        load_row = jnp.full((1, L), _LOAD, jnp.float32)   # hoisted broadcast

        for group in pair_groups:
            chans = sorted({c for p in group for c in p})

            def cov_body(i, carry, group=group, chans=chans):
                t0 = i * tchunk
                if not isinstance(t0, int):
                    t0 = pl.multiple_of(t0, tchunk)
                # each needed channel chunk is loaded ONCE and reused for all pairs
                vr, vi = {}, {}
                for c in chans:
                    vr[c] = v_ref[0, 0, c, pl.ds(t0, tchunk), :].astype(jnp.float32)
                    vi[c] = v_ref[0, 1, c, pl.ds(t0, tchunk), :].astype(jnp.float32)
                new = []
                k = 0
                for a, b in group:
                    if a == b:
                        pr = jnp.sum(vr[a] * vr[a] + vi[a] * vi[a],
                                     axis=0, keepdims=True)
                        new.append(carry[k] + pr); k += 1
                    else:
                        pr = jnp.sum(vr[a] * vr[b] + vi[a] * vi[b],
                                     axis=0, keepdims=True)
                        pi = jnp.sum(vi[a] * vr[b] - vr[a] * vi[b],
                                     axis=0, keepdims=True)
                        new.append(carry[k] + pr); k += 1
                        new.append(carry[k] + pi); k += 1
                return tuple(new)

            n_acc = sum(1 if a == b else 2 for a, b in group)
            init = tuple(jnp.zeros((1, L), jnp.float32) for _ in range(n_acc))
            if n_chunks == 1:
                acc = cov_body(0, init)
            else:
                acc = jax.lax.fori_loop(0, n_chunks, cov_body, init)

            k = 0
            for a, b in group:
                if a == b:
                    # diagonal is purely real; imaginary part is just the +j*load term
                    Ar[a][a] = acc[k] * inv_T + _LOAD; k += 1
                    Ai[a][a] = load_row
                else:
                    pr = acc[k] * inv_T; k += 1
                    pi = acc[k] * inv_T; k += 1
                    Ar[a][b] = pr; Ai[a][b] = pi
                    Ar[b][a] = pr; Ai[b][a] = -pi     # Phi[b][a] = conj(Phi[a][b])

        # ---- steering vector -------------------------------------------------------
        d_all_r = d_ref[0, 0].astype(jnp.float32)       # (C, L)
        d_all_i = d_ref[0, 1].astype(jnp.float32)
        dr = [d_all_r[c:c + 1, :] for c in range(C)]    # each (1, L)
        di = [d_all_i[c:c + 1, :] for c in range(C)]

        # ---- direct complex solve Phi x = d (single RHS, batched over lanes) -------
        # General (non-Hermitian) path because the +j*load diagonal term makes Phi
        # non-Hermitian, matching torch exactly.  No pivoting (loading keeps pivots
        # nonzero).  For C>=6 Ar/Ai could live in VMEM scratch to bound vreg pressure.
        xr = list(dr)
        xi = list(di)
        for k in range(C):
            pr, pi = Ar[k][k], Ai[k][k]
            inv_den = _recip(pr * pr + pi * pi)
            ipr = pr * inv_den
            ipi = -pi * inv_den
            for j in range(k + 1, C):
                ar, ai = Ar[k][j], Ai[k][j]
                Ar[k][j] = ar * ipr - ai * ipi
                Ai[k][j] = ar * ipi + ai * ipr
            br, bi = xr[k], xi[k]
            xr[k] = br * ipr - bi * ipi
            xi[k] = br * ipi + bi * ipr
            for i2 in range(k + 1, C):
                fr, fi = Ar[i2][k], Ai[i2][k]
                for j in range(k + 1, C):
                    akr, aki = Ar[k][j], Ai[k][j]
                    Ar[i2][j] = Ar[i2][j] - (fr * akr - fi * aki)
                    Ai[i2][j] = Ai[i2][j] - (fr * aki + fi * akr)
                xr[i2] = xr[i2] - (fr * xr[k] - fi * xi[k])
                xi[i2] = xi[i2] - (fr * xi[k] + fi * xr[k])
        # back substitution (unit diagonal, upper triangle only)
        for k in range(C - 1, 0, -1):
            for i2 in range(k):
                akr, aki = Ar[i2][k], Ai[i2][k]
                xr[i2] = xr[i2] - (akr * xr[k] - aki * xi[k])
                xi[i2] = xi[i2] - (akr * xi[k] + aki * xr[k])

        # ---- denominator d^H Phi^-1 d and MVDR weights -----------------------------
        den_r = dr[0] * xr[0] + di[0] * xi[0]
        den_i = dr[0] * xi[0] - di[0] * xr[0]
        for c in range(1, C):
            den_r = den_r + dr[c] * xr[c] + di[c] * xi[c]
            den_i = den_i + dr[c] * xi[c] - di[c] * xr[c]
        inv_mag = _recip(den_r * den_r + den_i * den_i)
        idr = den_r * inv_mag
        idi = -den_i * inv_mag
        wr = [xr[c] * idr - xi[c] * idi for c in range(C)]
        wi = [xr[c] * idi + xi[c] * idr for c in range(C)]

        # ---- apply beamformer: X(t,f) = sum_c conj(w_c(f)) * y_c(t,f), T-chunked ---
        # hoist the (1,L)->(tchunk,L) weight broadcasts once (no CSE of broadcasts)
        wrb = [jnp.broadcast_to(wr[c], (tchunk, L)) for c in range(C)]
        wib = [jnp.broadcast_to(wi[c], (tchunk, L)) for c in range(C)]

        def apply_body(i, carry):
            t0 = i * tchunk
            if not isinstance(t0, int):
                t0 = pl.multiple_of(t0, tchunk)
            Xr = None
            Xi = None
            for c in range(C):
                yr = y_ref[0, 0, c, pl.ds(t0, tchunk), :].astype(jnp.float32)
                yi = y_ref[0, 1, c, pl.ds(t0, tchunk), :].astype(jnp.float32)
                tr = wrb[c] * yr + wib[c] * yi
                ti = wrb[c] * yi - wib[c] * yr
                Xr = tr if Xr is None else Xr + tr
                Xi = ti if Xi is None else Xi + ti
            o_ref[0, 0, pl.ds(t0, tchunk), :] = Xr.astype(o_ref.dtype)
            o_ref[0, 1, pl.ds(t0, tchunk), :] = Xi.astype(o_ref.dtype)
            return carry

        if n_chunks == 1:
            apply_body(0, 0)
        else:
            jax.lax.fori_loop(0, n_chunks, apply_body, 0)

    return kernel


def mvdr_oracle_forward(inputs, ref_mic_idx=0, lane_block=None):
    """Pallas implementation of MVDR_oracle_using_steering_vector.forward."""
    # NOTE: ref_mic_idx / e_ref / G / dummy_weight are created but unused by the
    # torch forward pass; they do not affect the output.
    y = inputs['mixture']          # (N, 2, C, T, F)
    v = inputs['noise']            # (N, 2, C, T, F)
    d = inputs['steering_vector']  # (N, 2, F, C, 1)
    N, _, C, T, F = y.shape

    # --- T chunking (sublane aligned; smaller chunk for larger C = more pairs live)
    if C <= 2:
        tchunk = 32
    elif C <= 5:
        tchunk = 16
    else:
        tchunk = 8
    tchunk = min(tchunk, _round_up(T, 8))
    Tp = _round_up(T, tchunk)

    # --- lane (frequency) tiling: 128 minimum, 256 when F and VMEM budget allow ----
    if lane_block is None:
        lane_block = 256 if F >= 256 else 128
        # conservative per-step budget: 2x-buffered blocks well under v7x's 64 MiB.
        while lane_block > 128 and 2 * _step_block_bytes(C, Tp, lane_block) > (40 << 20):
            lane_block //= 2
    n_f = pl.cdiv(F, lane_block)
    Fp = n_f * lane_block

    # --- pad / repack inputs ---------------------------------------------------------
    pad_t = Tp - T
    pad_f = Fp - F
    # steering vector -> (N, 2, C, F) so F is the lane axis inside the kernel
    d_k = jnp.transpose(d[..., 0], (0, 1, 3, 2))
    if pad_t or pad_f:
        y_p = jnp.pad(y, ((0, 0), (0, 0), (0, 0), (0, pad_t), (0, pad_f)))
        v_p = jnp.pad(v, ((0, 0), (0, 0), (0, 0), (0, pad_t), (0, pad_f)))
    else:
        y_p, v_p = y, v
    if pad_f:
        d_k = jnp.pad(d_k, ((0, 0), (0, 0), (0, 0), (0, pad_f)))
        # keep padded frequency lanes well conditioned (unit steering on mic 0);
        # those lanes are sliced off below and never observed.
        d_k = d_k.at[:, 0, 0, F:].set(1.0)

    # --- explicit VMEM budget: double-buffered blocks + solve temporaries ------------
    blocks = _step_block_bytes(C, Tp, lane_block)
    solve_tmp = (2 * C * C + 8 * C + 32) * lane_block * 4
    vmem_need = 2 * blocks + solve_tmp + (2 << 20)
    vmem_limit = int(min(max(vmem_need, 32 << 20), 112 << 20))

    kernel = _make_mvdr_kernel(C=C, T_true=T, Tp=Tp, L=lane_block,
                               tchunk=tchunk, pair_groups=_pair_groups(C))

    out = pl.pallas_call(
        kernel,
        out_shape=jax.ShapeDtypeStruct((N, 2, Tp, Fp), y.dtype),
        grid_spec=pltpu.PrefetchScalarGridSpec(
            num_scalar_prefetch=0,
            grid=(N, n_f),                      # one batch item per step; grid batches
            in_specs=[
                pl.BlockSpec((1, 2, C, Tp, lane_block),
                             lambda n, f: (n, 0, 0, 0, f)),
                pl.BlockSpec((1, 2, C, Tp, lane_block),
                             lambda n, f: (n, 0, 0, 0, f)),
                pl.BlockSpec((1, 2, C, lane_block),
                             lambda n, f: (n, 0, 0, f)),
            ],
            out_specs=pl.BlockSpec((1, 2, Tp, lane_block),
                                   lambda n, f: (n, 0, 0, f)),
        ),
        compiler_params=pltpu.CompilerParams(
            # On v7x the F-tile axis could additionally be CORE_PARALLEL to shard
            # across the two TensorCores; kept generation-agnostic here.
            dimension_semantics=("parallel", "parallel"),
            vmem_limit_bytes=vmem_limit),
    )(v_p, y_p, d_k)

    # (N, 2, Tp, Fp) -> drop padding -> (N, 2, 1, T, F)
    out = out[:, :, :T, :F]
    return {'est_target': out[:, :, None, :, :]}


def mvdr_reference(inputs):
    """Pure-JAX complex reference for validation."""
    y = inputs['mixture']
    v = inputs['noise']
    d = inputs['steering_vector']
    N, _, C, T, F = y.shape
    load = 0.001 / np.sqrt(2.0)

    yc = y[:, 0] + 1j * y[:, 1]                     # (N, C, T, F)
    vc = v[:, 0] + 1j * v[:, 1]                     # (N, C, T, F)
    dc = d[:, 0] + 1j * d[:, 1]                     # (N, F, C, 1)

    v_p = jnp.transpose(vc, (0, 3, 2, 1))           # (N, F, T, C)
    phi = jnp.einsum('nfta,nftb->nfab', v_p, jnp.conj(v_p)) / T
    phi = phi + (load + 1j * load) * jnp.eye(C, dtype=phi.dtype)
    phi_inv = jnp.linalg.inv(phi)                   # (N, F, C, C)

    w_nume = phi_inv @ dc                           # (N, F, C, 1)
    dH = jnp.conj(jnp.swapaxes(dc, -1, -2))         # (N, F, 1, C)
    w_deno = dH @ phi_inv @ dc                      # (N, F, 1, 1)
    w = w_nume / w_deno                             # (N, F, C, 1)

    y_p = jnp.transpose(yc, (0, 3, 2, 1))           # (N, F, T, C)
    X = jnp.einsum('nfc,nftc->nft', jnp.conj(w[..., 0]), y_p)
    X = jnp.transpose(X, (0, 2, 1))                 # (N, T, F)
    return jnp.stack([X.real, X.imag], axis=1)[:, :, None].astype(y.dtype)


if __name__ == "__main__":
    # Small, deterministic shapes consistent with the module's forward pass.
    N, C, T, F = 2, 4, 8, 16
    key = jax.random.PRNGKey(0)
    k_y, k_v, k_d = jax.random.split(key, 3)

    mixture = jax.random.normal(k_y, (N, 2, C, T, F), dtype=jnp.float32)
    noise = jax.random.normal(k_v, (N, 2, C, T, F), dtype=jnp.float32)
    steering = jax.random.normal(k_d, (N, 2, F, C, 1), dtype=jnp.float32)

    # Deterministic module "parameters" (unused by forward, mirrored for completeness).
    dummy_weight = jnp.zeros((1,), jnp.float32)  # nn.Parameter(torch.zeros(1))
    ref_mic_idx = 0

    inputs = {'mixture': mixture, 'noise': noise, 'steering_vector': steering}

    out = mvdr_oracle_forward(inputs, ref_mic_idx=ref_mic_idx)
    est = jax.block_until_ready(out['est_target'])
    assert est.shape == (N, 2, 1, T, F), est.shape

    ref = jax.block_until_ready(mvdr_reference(inputs))
    rel_err = float(jnp.max(jnp.abs(est - ref)) / (jnp.max(jnp.abs(ref)) + 1e-6))
    assert rel_err < 5e-3, f"mismatch vs reference: rel_err={rel_err}"

    print("KERNEL_OK")
</pallas_src>

<mosaic_0001>
module attributes {stable_mosaic.version = 11 : i64} {
  func.func @kernel(%arg0: i32, %arg1: i32, %arg2: memref<1x2x4x8x128xf32, #tpu.memory_space<vmem>>, %arg3: memref<1x2x4x8x128xf32, #tpu.memory_space<vmem>>, %arg4: memref<1x2x4x128xf32, #tpu.memory_space<vmem>>, %arg5: memref<1x2x8x128xf32, #tpu.memory_space<vmem>>) attributes {dimension_semantics = [#tpu.dimension_semantics<parallel>, #tpu.dimension_semantics<parallel>], iteration_bounds = array<i64: 2, 1>, scalar_prefetch = 0 : i64, scratch_operands = 0 : i64, tpu.core_type = #tpu.core_type<tc>, window_params = [{transform_indices = @transform_0, window_bounds = array<i64: 1, 2, 4, 8, 128>}, {transform_indices = @transform_1, window_bounds = array<i64: 1, 2, 4, 8, 128>}, {transform_indices = @transform_2, window_bounds = array<i64: 1, 2, 4, 128>}, {transform_indices = @transform_3, window_bounds = array<i64: 1, 2, 8, 128>}]} {
    %cst = arith.constant 7.07106781E-4 : f32
    %0 = vector.broadcast %cst : f32 to vector<1x128xf32>
    %cst_0 = arith.constant 0.000000e+00 : f32
    %1 = vector.broadcast %cst_0 : f32 to vector<1x128xf32>
    %cst_1 = arith.constant 0.000000e+00 : f32
    %2 = vector.broadcast %cst_1 : f32 to vector<1x128xf32>
    %cst_2 = arith.constant 0.000000e+00 : f32
    %3 = vector.broadcast %cst_2 : f32 to vector<1x128xf32>
    %cst_3 = arith.constant 0.000000e+00 : f32
    %4 = vector.broadcast %cst_3 : f32 to vector<1x128xf32>
    %cst_4 = arith.constant 0.000000e+00 : f32
    %5 = vector.broadcast %cst_4 : f32 to vector<1x128xf32>
    %cst_5 = arith.constant 0.000000e+00 : f32
    %6 = vector.broadcast %cst_5 : f32 to vector<1x128xf32>
    %cst_6 = arith.constant 0.000000e+00 : f32
    %7 = vector.broadcast %cst_6 : f32 to vector<1x128xf32>
    %cst_7 = arith.constant 0.000000e+00 : f32
    %8 = vector.broadcast %cst_7 : f32 to vector<1x128xf32>
    %cst_8 = arith.constant 0.000000e+00 : f32
    %9 = vector.broadcast %cst_8 : f32 to vector<1x128xf32>
    %cst_9 = arith.constant 0.000000e+00 : f32
    %10 = vector.broadcast %cst_9 : f32 to vector<1x128xf32>
    %cst_10 = arith.constant 0.000000e+00 : f32
    %11 = vector.broadcast %cst_10 : f32 to vector<1x128xf32>
    %cst_11 = arith.constant 0.000000e+00 : f32
    %12 = vector.broadcast %cst_11 : f32 to vector<1x128xf32>
    %cst_12 = arith.constant 0.000000e+00 : f32
    %13 = vector.broadcast %cst_12 : f32 to vector<1x128xf32>
    %cst_13 = arith.constant 0.000000e+00 : f32
    %14 = vector.broadcast %cst_13 : f32 to vector<1x128xf32>
    %cst_14 = arith.constant 0.000000e+00 : f32
    %15 = vector.broadcast %cst_14 : f32 to vector<1x128xf32>
    %cst_15 = arith.constant 0.000000e+00 : f32
    %16 = vector.broadcast %cst_15 : f32 to vector<1x128xf32>
    %c0 = arith.constant 0 : index
    %c0_16 = arith.constant 0 : index
    %c0_17 = arith.constant 0 : index
    %c0_18 = arith.constant 0 : index
    %c0_19 = arith.constant 0 : index
    %17 = vector.load %arg2[%c0, %c0_16, %c0_17, %c0_18, %c0_19] : memref<1x2x4x8x128xf32, #tpu.memory_space<vmem>>, vector<1x1x1x8x128xf32>
    %18 = vector.shape_cast %17 : vector<1x1x1x8x128xf32> to vector<8x128xf32>
    %c0_20 = arith.constant 0 : index
    %c1 = arith.constant 1 : index
    %c0_21 = arith.constant 0 : index
    %c0_22 = arith.constant 0 : index
    %c0_23 = arith.constant 0 : index
    %19 = vector.load %arg2[%c0_20, %c1, %c0_21, %c0_22, %c0_23] : memref<1x2x4x8x128xf32, #tpu.memory_space<vmem>>, vector<1x1x1x8x128xf32>
    %20 = vector.shape_cast %19 : vector<1x1x1x8x128xf32> to vector<8x128xf32>
    %c0_24 = arith.constant 0 : index
    %c0_25 = arith.constant 0 : index
    %c1_26 = arith.constant 1 : index
    %c0_27 = arith.constant 0 : index
    %c0_28 = arith.constant 0 : index
    %21 = vector.load %arg2[%c0_24, %c0_25, %c1_26, %c0_27, %c0_28] : memref<1x2x4x8x128xf32, #tpu.memory_space<vmem>>, vector<1x1x1x8x128xf32>
    %22 = vector.shape_cast %21 : vector<1x1x1x8x128xf32> to vector<8x128xf32>
    %c0_29 = arith.constant 0 : index
    %c1_30 = arith.constant 1 : index
    %c1_31 = arith.constant 1 : index
    %c0_32 = arith.constant 0 : index
    %c0_33 = arith.constant 0 : index
    %23 = vector.load %arg2[%c0_29, %c1_30, %c1_31, %c0_32, %c0_33] : memref<1x2x4x8x128xf32, #tpu.memory_space<vmem>>, vector<1x1x1x8x128xf32>
    %24 = vector.shape_cast %23 : vector<1x1x1x8x128xf32> to vector<8x128xf32>
    %c0_34 = arith.constant 0 : index
    %c0_35 = arith.constant 0 : index
    %c2 = arith.constant 2 : index
    %c0_36 = arith.constant 0 : index
    %c0_37 = arith.constant 0 : index
    %25 = vector.load %arg2[%c0_34, %c0_35, %c2, %c0_36, %c0_37] : memref<1x2x4x8x128xf32, #tpu.memory_space<vmem>>, vector<1x1x1x8x128xf32>
    %26 = vector.shape_cast %25 : vector<1x1x1x8x128xf32> to vector<8x128xf32>
    %c0_38 = arith.constant 0 : index
    %c1_39 = arith.constant 1 : index
    %c2_40 = arith.constant 2 : index
    %c0_41 = arith.constant 0 : index
    %c0_42 = arith.constant 0 : index
    %27 = vector.load %arg2[%c0_38, %c1_39, %c2_40, %c0_41, %c0_42] : memref<1x2x4x8x128xf32, #tpu.memory_space<vmem>>, vector<1x1x1x8x128xf32>
    %28 = vector.shape_cast %27 : vector<1x1x1x8x128xf32> to vector<8x128xf32>
    %c0_43 = arith.constant 0 : index
    %c0_44 = arith.constant 0 : index
    %c3 = arith.constant 3 : index
    %c0_45 = arith.constant 0 : index
    %c0_46 = arith.constant 0 : index
    %29 = vector.load %arg2[%c0_43, %c0_44, %c3, %c0_45, %c0_46] : memref<1x2x4x8x128xf32, #tpu.memory_space<vmem>>, vector<1x1x1x8x128xf32>
    %30 = vector.shape_cast %29 : vector<1x1x1x8x128xf32> to vector<8x128xf32>
    %c0_47 = arith.constant 0 : index
    %c1_48 = arith.constant 1 : index
    %c3_49 = arith.constant 3 : index
    %c0_50 = arith.constant 0 : index
    %c0_51 = arith.constant 0 : index
    %31 = vector.load %arg2[%c0_47, %c1_48, %c3_49, %c0_50, %c0_51] : memref<1x2x4x8x128xf32, #tpu.memory_space<vmem>>, vector<1x1x1x8x128xf32>
    %32 = vector.shape_cast %31 : vector<1x1x1x8x128xf32> to vector<8x128xf32>
    %33 = arith.mulf %18, %18 : vector<8x128xf32>
    %34 = arith.mulf %20, %20 : vector<8x128xf32>
    %35 = arith.addf %33, %34 : vector<8x128xf32>
    %cst_52 = arith.constant dense<0.000000e+00> : vector<128xf32>
    %36 = vector.multi_reduction <add>, %35, %cst_52 [0] : vector<8x128xf32> to vector<128xf32>
    %37 = vector.shape_cast %36 : vector<128xf32> to vector<1x128xf32>
    %38 = arith.addf %1, %37 : vector<1x128xf32>
    %39 = arith.mulf %18, %22 : vector<8x128xf32>
    %40 = arith.mulf %20, %24 : vector<8x128xf32>
    %41 = arith.addf %39, %40 : vector<8x128xf32>
    %cst_53 = arith.constant dense<0.000000e+00> : vector<128xf32>
    %42 = vector.multi_reduction <add>, %41, %cst_53 [0] : vector<8x128xf32> to vector<128xf32>
    %43 = vector.shape_cast %42 : vector<128xf32> to vector<1x128xf32>
    %44 = arith.mulf %20, %22 : vector<8x128xf32>
    %45 = arith.mulf %18, %24 : vector<8x128xf32>
    %46 = arith.subf %44, %45 : vector<8x128xf32>
    %cst_54 = arith.constant dense<0.000000e+00> : vector<128xf32>
    %47 = vector.multi_reduction <add>, %46, %cst_54 [0] : vector<8x128xf32> to vector<128xf32>
    %48 = vector.shape_cast %47 : vector<128xf32> to vector<1x128xf32>
    %49 = arith.addf %2, %43 : vector<1x128xf32>
    %50 = arith.addf %3, %48 : vector<1x128xf32>
    %51 = arith.mulf %18, %26 : vector<8x128xf32>
    %52 = arith.mulf %20, %28 : vector<8x128xf32>
    %53 = arith.addf %51, %52 : vector<8x128xf32>
    %cst_55 = arith.constant dense<0.000000e+00> : vector<128xf32>
    %54 = vector.multi_reduction <add>, %53, %cst_55 [0] : vector<8x128xf32> to vector<128xf32>
    %55 = vector.shape_cast %54 : vector<128xf32> to vector<1x128xf32>
    %56 = arith.mulf %20, %26 : vector<8x128xf32>
    %57 = arith.mulf %18, %28 : vector<8x128xf32>
    %58 = arith.subf %56, %57 : vector<8x128xf32>
    %cst_56 = arith.constant dense<0.000000e+00> : vector<128xf32>
    %59 = vector.multi_reduction <add>, %58, %cst_56 [0] : vector<8x128xf32> to vector<128xf32>
    %60 = vector.shape_cast %59 : vector<128xf32> to vector<1x128xf32>
    %61 = arith.addf %4, %55 : vector<1x128xf32>
    %62 = arith.addf %5, %60 : vector<1x128xf32>
    %63 = arith.mulf %18, %30 : vector<8x128xf32>
    %64 = arith.mulf %20, %32 : vector<8x128xf32>
    %65 = arith.addf %63, %64 : vector<8x128xf32>
    %cst_57 = arith.constant dense<0.000000e+00> : vector<128xf32>
    %66 = vector.multi_reduction <add>, %65, %cst_57 [0] : vector<8x128xf32> to vector<128xf32>
    %67 = vector.shape_cast %66 : vector<128xf32> to vector<1x128xf32>
    %68 = arith.mulf %20, %30 : vector<8x128xf32>
    %69 = arith.mulf %18, %32 : vector<8x128xf32>
    %70 = arith.subf %68, %69 : vector<8x128xf32>
    %cst_58 = arith.constant dense<0.000000e+00> : vector<128xf32>
    %71 = vector.multi_reduction <add>, %70, %cst_58 [0] : vector<8x128xf32> to vector<128xf32>
    %72 = vector.shape_cast %71 : vector<128xf32> to vector<1x128xf32>
    %73 = arith.addf %6, %67 : vector<1x128xf32>
    %74 = arith.addf %7, %72 : vector<1x128xf32>
    %75 = arith.mulf %22, %22 : vector<8x128xf32>
    %76 = arith.mulf %24, %24 : vector<8x128xf32>
    %77 = arith.addf %75, %76 : vector<8x128xf32>
    %cst_59 = arith.constant dense<0.000000e+00> : vector<128xf32>
    %78 = vector.multi_reduction <add>, %77, %cst_59 [0] : vector<8x128xf32> to vector<128xf32>
    %79 = vector.shape_cast %78 : vector<128xf32> to vector<1x128xf32>
    %80 = arith.addf %8, %79 : vector<1x128xf32>
    %81 = arith.mulf %22, %26 : vector<8x128xf32>
    %82 = arith.mulf %24, %28 : vector<8x128xf32>
    %83 = arith.addf %81, %82 : vector<8x128xf32>
    %cst_60 = arith.constant dense<0.000000e+00> : vector<128xf32>
    %84 = vector.multi_reduction <add>, %83, %cst_60 [0] : vector<8x128xf32> to vector<128xf32>
    %85 = vector.shape_cast %84 : vector<128xf32> to vector<1x128xf32>
    %86 = arith.mulf %24, %26 : vector<8x128xf32>
    %87 = arith.mulf %22, %28 : vector<8x128xf32>
    %88 = arith.subf %86, %87 : vector<8x128xf32>
    %cst_61 = arith.constant dense<0.000000e+00> : vector<128xf32>
    %89 = vector.multi_reduction <add>, %88, %cst_61 [0] : vector<8x128xf32> to vector<128xf32>
    %90 = vector.shape_cast %89 : vector<128xf32> to vector<1x128xf32>
    %91 = arith.addf %9, %85 : vector<1x128xf32>
    %92 = arith.addf %10, %90 : vector<1x128xf32>
    %93 = arith.mulf %22, %30 : vector<8x128xf32>
    %94 = arith.mulf %24, %32 : vector<8x128xf32>
    %95 = arith.addf %93, %94 : vector<8x128xf32>
    %cst_62 = arith.constant dense<0.000000e+00> : vector<128xf32>
    %96 = vector.multi_reduction <add>, %95, %cst_62 [0] : vector<8x128xf32> to vector<128xf32>
    %97 = vector.shape_cast %96 : vector<128xf32> to vector<1x128xf32>
    %98 = arith.mulf %24, %30 : vector<8x128xf32>
    %99 = arith.mulf %22, %32 : vector<8x128xf32>
    %100 = arith.subf %98, %99 : vector<8x128xf32>
    %cst_63 = arith.constant dense<0.000000e+00> : vector<128xf32>
    %101 = vector.multi_reduction <add>, %100, %cst_63 [0] : vector<8x128xf32> to vector<128xf32>
    %102 = vector.shape_cast %101 : vector<128xf32> to vector<1x128xf32>
    %103 = arith.addf %11, %97 : vector<1x128xf32>
    %104 = arith.addf %12, %102 : vector<1x128xf32>
    %105 = arith.mulf %26, %26 : vector<8x128xf32>
    %106 = arith.mulf %28, %28 : vector<8x128xf32>
    %107 = arith.addf %105, %106 : vector<8x128xf32>
    %cst_64 = arith.constant dense<0.000000e+00> : vector<128xf32>
    %108 = vector.multi_reduction <add>, %107, %cst_64 [0] : vector<8x128xf32> to vector<128xf32>
    %109 = vector.shape_cast %108 : vector<128xf32> to vector<1x128xf32>
    %110 = arith.addf %13, %109 : vector<1x128xf32>
    %111 = arith.mulf %26, %30 : vector<8x128xf32>
    %112 = arith.mulf %28, %32 : vector<8x128xf32>
    %113 = arith.addf %111, %112 : vector<8x128xf32>
    %cst_65 = arith.constant dense<0.000000e+00> : vector<128xf32>
    %114 = vector.multi_reduction <add>, %113, %cst_65 [0] : vector<8x128xf32> to vector<128xf32>
    %115 = vector.shape_cast %114 : vector<128xf32> to vector<1x128xf32>
    %116 = arith.mulf %28, %30 : vector<8x128xf32>
    %117 = arith.mulf %26, %32 : vector<8x128xf32>
    %118 = arith.subf %116, %117 : vector<8x128xf32>
    %cst_66 = arith.constant dense<0.000000e+00> : vector<128xf32>
    %119 = vector.multi_reduction <add>, %118, %cst_66 [0] : vector<8x128xf32> to vector<128xf32>
    %120 = vector.shape_cast %119 : vector<128xf32> to vector<1x128xf32>
    %121 = arith.addf %14, %115 : vector<1x128xf32>
    %122 = arith.addf %15, %120 : vector<1x128xf32>
    %123 = arith.mulf %30, %30 : vector<8x128xf32>
    %124 = arith.mulf %32, %32 : vector<8x128xf32>
    %125 = arith.addf %123, %124 : vector<8x128xf32>
    %cst_67 = arith.constant dense<0.000000e+00> : vector<128xf32>
    %126 = vector.multi_reduction <add>, %125, %cst_67 [0] : vector<8x128xf32> to vector<128xf32>
    %127 = vector.shape_cast %126 : vector<128xf32> to vector<1x128xf32>
    %128 = arith.addf %16, %127 : vector<1x128xf32>
    %cst_68 = arith.constant 1.250000e-01 : f32
    %129 = vector.broadcast %cst_68 : f32 to vector<1x128xf32>
    %130 = arith.mulf %38, %129 : vector<1x128xf32>
    %cst_69 = arith.constant 7.07106781E-4 : f32
    %131 = vector.broadcast %cst_69 : f32 to vector<1x128xf32>
    %132 = arith.addf %130, %131 : vector<1x128xf32>
    %cst_70 = arith.constant 1.250000e-01 : f32
    %133 = vector.broadcast %cst_70 : f32 to vector<1x128xf32>
    %134 = arith.mulf %49, %133 : vector<1x128xf32>
    %cst_71 = arith.constant 1.250000e-01 : f32
    %135 = vector.broadcast %cst_71 : f32 to vector<1x128xf32>
    %136 = arith.mulf %50, %135 : vector<1x128xf32>
    %cst_72 = arith.constant 0.000000e+00 : f32
    %137 = vector.broadcast %cst_72 : f32 to vector<1x128xf32>
    %138 = arith.subf %137, %136 : vector<1x128xf32>
    %cst_73 = arith.constant 1.250000e-01 : f32
    %139 = vector.broadcast %cst_73 : f32 to vector<1x128xf32>
    %140 = arith.mulf %61, %139 : vector<1x128xf32>
    %cst_74 = arith.constant 1.250000e-01 : f32
    %141 = vector.broadcast %cst_74 : f32 to vector<1x128xf32>
    %142 = arith.mulf %62, %141 : vector<1x128xf32>
    %cst_75 = arith.constant 0.000000e+00 : f32
    %143 = vector.broadcast %cst_75 : f32 to vector<1x128xf32>
    %144 = arith.subf %143, %142 : vector<1x128xf32>
    %cst_76 = arith.constant 1.250000e-01 : f32
    %145 = vector.broadcast %cst_76 : f32 to vector<1x128xf32>
    %146 = arith.mulf %73, %145 : vector<1x128xf32>
    %cst_77 = arith.constant 1.250000e-01 : f32
    %147 = vector.broadcast %cst_77 : f32 to vector<1x128xf32>
    %148 = arith.mulf %74, %147 : vector<1x128xf32>
    %cst_78 = arith.constant 0.000000e+00 : f32
    %149 = vector.broadcast %cst_78 : f32 to vector<1x128xf32>
    %150 = arith.subf %149, %148 : vector<1x128xf32>
    %cst_79 = arith.constant 1.250000e-01 : f32
    %151 = vector.broadcast %cst_79 : f32 to vector<1x128xf32>
    %152 = arith.mulf %80, %151 : vector<1x128xf32>
    %cst_80 = arith.constant 7.07106781E-4 : f32
    %153 = vector.broadcast %cst_80 : f32 to vector<1x128xf32>
    %154 = arith.addf %152, %153 : vector<1x128xf32>
    %cst_81 = arith.constant 1.250000e-01 : f32
    %155 = vector.broadcast %cst_81 : f32 to vector<1x128xf32>
    %156 = arith.mulf %91, %155 : vector<1x128xf32>
    %cst_82 = arith.constant 1.250000e-01 : f32
    %157 = vector.broadcast %cst_82 : f32 to vector<1x128xf32>
    %158 = arith.mulf %92, %157 : vector<1x128xf32>
    %cst_83 = arith.constant 0.000000e+00 : f32
    %159 = vector.broadcast %cst_83 : f32 to vector<1x128xf32>
    %160 = arith.subf %159, %158 : vector<1x128xf32>
    %cst_84 = arith.constant 1.250000e-01 : f32
    %161 = vector.broadcast %cst_84 : f32 to vector<1x128xf32>
    %162 = arith.mulf %103, %161 : vector<1x128xf32>
    %cst_85 = arith.constant 1.250000e-01 : f32
    %163 = vector.broadcast %cst_85 : f32 to vector<1x128xf32>
    %164 = arith.mulf %104, %163 : vector<1x128xf32>
    %cst_86 = arith.constant 0.000000e+00 : f32
    %165 = vector.broadcast %cst_86 : f32 to vector<1x128xf32>
    %166 = arith.subf %165, %164 : vector<1x128xf32>
    %cst_87 = arith.constant 1.250000e-01 : f32
    %167 = vector.broadcast %cst_87 : f32 to vector<1x128xf32>
    %168 = arith.mulf %110, %167 : vector<1x128xf32>
    %cst_88 = arith.constant 7.07106781E-4 : f32
    %169 = vector.broadcast %cst_88 : f32 to vector<1x128xf32>
    %170 = arith.addf %168, %169 : vector<1x128xf32>
    %cst_89 = arith.constant 1.250000e-01 : f32
    %171 = vector.broadcast %cst_89 : f32 to vector<1x128xf32>
    %172 = arith.mulf %121, %171 : vector<1x128xf32>
    %cst_90 = arith.constant 1.250000e-01 : f32
    %173 = vector.broadcast %cst_90 : f32 to vector<1x128xf32>
    %174 = arith.mulf %122, %173 : vector<1x128xf32>
    %cst_91 = arith.constant 0.000000e+00 : f32
    %175 = vector.broadcast %cst_91 : f32 to vector<1x128xf32>
    %176 = arith.subf %175, %174 : vector<1x128xf32>
    %cst_92 = arith.constant 1.250000e-01 : f32
    %177 = vector.broadcast %cst_92 : f32 to vector<1x128xf32>
    %178 = arith.mulf %128, %177 : vector<1x128xf32>
    %cst_93 = arith.constant 7.07106781E-4 : f32
    %179 = vector.broadcast %cst_93 : f32 to vector<1x128xf32>
    %180 = arith.addf %178, %179 : vector<1x128xf32>
    %c0_94 = arith.constant 0 : index
    %c0_95 = arith.constant 0 : index
    %c0_96 = arith.constant 0 : index
    %c0_97 = arith.constant 0 : index
    %181 = vector.load %arg4[%c0_94, %c0_95, %c0_96, %c0_97] : memref<1x2x4x128xf32, #tpu.memory_space<vmem>>, vector<1x1x4x128xf32>
    %182 = vector.shape_cast %181 : vector<1x1x4x128xf32> to vector<4x128xf32>
    %c0_98 = arith.constant 0 : index
    %c1_99 = arith.constant 1 : index
    %c0_100 = arith.constant 0 : index
    %c0_101 = arith.constant 0 : index
    %183 = vector.load %arg4[%c0_98, %c1_99, %c0_100, %c0_101] : memref<1x2x4x128xf32, #tpu.memory_space<vmem>>, vector<1x1x4x128xf32>
    %184 = vector.shape_cast %183 : vector<1x1x4x128xf32> to vector<4x128xf32>
    %185 = vector.extract_strided_slice %182 {offsets = [0, 0], sizes = [1, 128], strides = [1, 1]} : vector<4x128xf32> to vector<1x128xf32>
    %186 = vector.extract_strided_slice %182 {offsets = [1, 0], sizes = [1, 128], strides = [1, 1]} : vector<4x128xf32> to vector<1x128xf32>
    %187 = vector.extract_strided_slice %182 {offsets = [2, 0], sizes = [1, 128], strides = [1, 1]} : vector<4x128xf32> to vector<1x128xf32>
    %188 = vector.extract_strided_slice %182 {offsets = [3, 0], sizes = [1, 128], strides = [1, 1]} : vector<4x128xf32> to vector<1x128xf32>
    %189 = vector.extract_strided_slice %184 {offsets = [0, 0], sizes = [1, 128], strides = [1, 1]} : vector<4x128xf32> to vector<1x128xf32>
    %190 = vector.extract_strided_slice %184 {offsets = [1, 0], sizes = [1, 128], strides = [1, 1]} : vector<4x128xf32> to vector<1x128xf32>
    %191 = vector.extract_strided_slice %184 {offsets = [2, 0], sizes = [1, 128], strides = [1, 1]} : vector<4x128xf32> to vector<1x128xf32>
    %192 = vector.extract_strided_slice %184 {offsets = [3, 0], sizes = [1, 128], strides = [1, 1]} : vector<4x128xf32> to vector<1x128xf32>
    %193 = arith.mulf %132, %132 : vector<1x128xf32>
    %194 = arith.mulf %0, %0 : vector<1x128xf32>
    %195 = arith.addf %193, %194 : vector<1x128xf32>
    %196 = tpu.reciprocal %195 {approx = true} : vector<1x128xf32> -> vector<1x128xf32>
    %197 = arith.mulf %195, %196 : vector<1x128xf32>
    %cst_102 = arith.constant 2.000000e+00 : f32
    %198 = vector.broadcast %cst_102 : f32 to vector<1x128xf32>
    %199 = arith.subf %198, %197 : vector<1x128xf32>
    %200 = arith.mulf %196, %199 : vector<1x128xf32>
    %201 = arith.mulf %132, %200 : vector<1x128xf32>
    %cst_103 = arith.constant 0.000000e+00 : f32
    %202 = vector.broadcast %cst_103 : f32 to vector<1x128xf32>
    %203 = arith.subf %202, %0 : vector<1x128xf32>
    %204 = arith.mulf %203, %200 : vector<1x128xf32>
    %205 = arith.mulf %134, %201 : vector<1x128xf32>
    %206 = arith.mulf %136, %204 : vector<1x128xf32>
    %207 = arith.subf %205, %206 : vector<1x128xf32>
    %208 = arith.mulf %134, %204 : vector<1x128xf32>
    %209 = arith.mulf %136, %201 : vector<1x128xf32>
    %210 = arith.addf %208, %209 : vector<1x128xf32>
    %211 = arith.mulf %140, %201 : vector<1x128xf32>
    %212 = arith.mulf %142, %204 : vector<1x128xf32>
    %213 = arith.subf %211, %212 : vector<1x128xf32>
    %214 = arith.mulf %140, %204 : vector<1x128xf32>
    %215 = arith.mulf %142, %201 : vector<1x128xf32>
    %216 = arith.addf %214, %215 : vector<1x128xf32>
    %217 = arith.mulf %146, %201 : vector<1x128xf32>
    %218 = arith.mulf %148, %204 : vector<1x128xf32>
    %219 = arith.subf %217, %218 : vector<1x128xf32>
    %220 = arith.mulf %146, %204 : vector<1x128xf32>
    %221 = arith.mulf %148, %201 : vector<1x128xf32>
    %222 = arith.addf %220, %221 : vector<1x128xf32>
    %223 = arith.mulf %185, %201 : vector<1x128xf32>
    %224 = arith.mulf %189, %204 : vector<1x128xf32>
    %225 = arith.subf %223, %224 : vector<1x128xf32>
    %226 = arith.mulf %185, %204 : vector<1x128xf32>
    %227 = arith.mulf %189, %201 : vector<1x128xf32>
    %228 = arith.addf %226, %227 : vector<1x128xf32>
    %229 = arith.mulf %134, %207 : vector<1x128xf32>
    %230 = arith.mulf %138, %210 : vector<1x128xf32>
    %231 = arith.subf %229, %230 : vector<1x128xf32>
    %232 = arith.subf %154, %231 : vector<1x128xf32>
    %233 = arith.mulf %134, %210 : vector<1x128xf32>
    %234 = arith.mulf %138, %207 : vector<1x128xf32>
    %235 = arith.addf %233, %234 : vector<1x128xf32>
    %236 = arith.subf %0, %235 : vector<1x128xf32>
    %237 = arith.mulf %134, %213 : vector<1x128xf32>
    %238 = arith.mulf %138, %216 : vector<1x128xf32>
    %239 = arith.subf %237, %238 : vector<1x128xf32>
    %240 = arith.subf %156, %239 : vector<1x128xf32>
    %241 = arith.mulf %134, %216 : vector<1x128xf32>
    %242 = arith.mulf %138, %213 : vector<1x128xf32>
    %243 = arith.addf %241, %242 : vector<1x128xf32>
    %244 = arith.subf %158, %243 : vector<1x128xf32>
    %245 = arith.mulf %134, %219 : vector<1x128xf32>
    %246 = arith.mulf %138, %222 : vector<1x128xf32>
    %247 = arith.subf %245, %246 : vector<1x128xf32>
    %248 = arith.subf %162, %247 : vector<1x128xf32>
    %249 = arith.mulf %134, %222 : vector<1x128xf32>
    %250 = arith.mulf %138, %219 : vector<1x128xf32>
    %251 = arith.addf %249, %250 : vector<1x128xf32>
    %252 = arith.subf %164, %251 : vector<1x128xf32>
    %253 = arith.mulf %134, %225 : vector<1x128xf32>
    %254 = arith.mulf %138, %228 : vector<1x128xf32>
    %255 = arith.subf %253, %254 : vector<1x128xf32>
    %256 = arith.subf %186, %255 : vector<1x128xf32>
    %257 = arith.mulf %134, %228 : vector<1x128xf32>
    %258 = arith.mulf %138, %225 : vector<1x128xf32>
    %259 = arith.addf %257, %258 : vector<1x128xf32>
    %260 = arith.subf %190, %259 : vector<1x128xf32>
    %261 = arith.mulf %140, %207 : vector<1x128xf32>
    %262 = arith.mulf %144, %210 : vector<1x128xf32>
    %263 = arith.subf %261, %262 : vector<1x128xf32>
    %264 = arith.subf %156, %263 : vector<1x128xf32>
    %265 = arith.mulf %140, %210 : vector<1x128xf32>
    %266 = arith.mulf %144, %207 : vector<1x128xf32>
    %267 = arith.addf %265, %266 : vector<1x128xf32>
    %268 = arith.subf %160, %267 : vector<1x128xf32>
    %269 = arith.mulf %140, %213 : vector<1x128xf32>
    %270 = arith.mulf %144, %216 : vector<1x128xf32>
    %271 = arith.subf %269, %270 : vector<1x128xf32>
    %272 = arith.subf %170, %271 : vector<1x128xf32>
    %273 = arith.mulf %140, %216 : vector<1x128xf32>
    %274 = arith.mulf %144, %213 : vector<1x128xf32>
    %275 = arith.addf %273, %274 : vector<1x128xf32>
    %276 = arith.subf %0, %275 : vector<1x128xf32>
    %277 = arith.mulf %140, %219 : vector<1x128xf32>
    %278 = arith.mulf %144, %222 : vector<1x128xf32>
    %279 = arith.subf %277, %278 : vector<1x128xf32>
    %280 = arith.subf %172, %279 : vector<1x128xf32>
    %281 = arith.mulf %140, %222 : vector<1x128xf32>
    %282 = arith.mulf %144, %219 : vector<1x128xf32>
    %283 = arith.addf %281, %282 : vector<1x128xf32>
    %284 = arith.subf %174, %283 : vector<1x128xf32>
    %285 = arith.mulf %140, %225 : vector<1x128xf32>
    %286 = arith.mulf %144, %228 : vector<1x128xf32>
    %287 = arith.subf %285, %286 : vector<1x128xf32>
    %288 = arith.subf %187, %287 : vector<1x128xf32>
    %289 = arith.mulf %140, %228 : vector<1x128xf32>
    %290 = arith.mulf %144, %225 : vector<1x128xf32>
    %291 = arith.addf %289, %290 : vector<1x128xf32>
    %292 = arith.subf %191, %291 : vector<1x128xf32>
    %293 = arith.mulf %146, %207 : vector<1x128xf32>
    %294 = arith.mulf %150, %210 : vector<1x128xf32>
    %295 = arith.subf %293, %294 : vector<1x128xf32>
    %296 = arith.subf %162, %295 : vector<1x128xf32>
    %297 = arith.mulf %146, %210 : vector<1x128xf32>
    %298 = arith.mulf %150, %207 : vector<1x128xf32>
    %299 = arith.addf %297, %298 : vector<1x128xf32>
    %300 = arith.subf %166, %299 : vector<1x128xf32>
    %301 = arith.mulf %146, %213 : vector<1x128xf32>
    %302 = arith.mulf %150, %216 : vector<1x128xf32>
    %303 = arith.subf %301, %302 : vector<1x128xf32>
    %304 = arith.subf %172, %303 : vector<1x128xf32>
    %305 = arith.mulf %146, %216 : vector<1x128xf32>
    %306 = arith.mulf %150, %213 : vector<1x128xf32>
    %307 = arith.addf %305, %306 : vector<1x128xf32>
    %308 = arith.subf %176, %307 : vector<1x128xf32>
    %309 = arith.mulf %146, %219 : vector<1x128xf32>
    %310 = arith.mulf %150, %222 : vector<1x128xf32>
    %311 = arith.subf %309, %310 : vector<1x128xf32>
    %312 = arith.subf %180, %311 : vector<1x128xf32>
    %313 = arith.mulf %146, %222 : vector<1x128xf32>
    %314 = arith.mulf %150, %219 : vector<1x128xf32>
    %315 = arith.addf %313, %314 : vector<1x128xf32>
    %316 = arith.subf %0, %315 : vector<1x128xf32>
    %317 = arith.mulf %146, %225 : vector<1x128xf32>
    %318 = arith.mulf %150, %228 : vector<1x128xf32>
    %319 = arith.subf %317, %318 : vector<1x128xf32>
    %320 = arith.subf %188, %319 : vector<1x128xf32>
    %321 = arith.mulf %146, %228 : vector<1x128xf32>
    %322 = arith.mulf %150, %225 : vector<1x128xf32>
    %323 = arith.addf %321, %322 : vector<1x128xf32>
    %324 = arith.subf %192, %323 : vector<1x128xf32>
    %325 = arith.mulf %232, %232 : vector<1x128xf32>
    %326 = arith.mulf %236, %236 : vector<1x128xf32>
    %327 = arith.addf %325, %326 : vector<1x128xf32>
    %328 = tpu.reciprocal %327 {approx = true} : vector<1x128xf32> -> vector<1x128xf32>
    %329 = arith.mulf %327, %328 : vector<1x128xf32>
    %cst_104 = arith.constant 2.000000e+00 : f32
    %330 = vector.broadcast %cst_104 : f32 to vector<1x128xf32>
    %331 = arith.subf %330, %329 : vector<1x128xf32>
    %332 = arith.mulf %328, %331 : vector<1x128xf32>
    %333 = arith.mulf %232, %332 : vector<1x128xf32>
    %cst_105 = arith.constant 0.000000e+00 : f32
    %334 = vector.broadcast %cst_105 : f32 to vector<1x128xf32>
    %335 = arith.subf %334, %236 : vector<1x128xf32>
    %336 = arith.mulf %335, %332 : vector<1x128xf32>
    %337 = arith.mulf %240, %333 : vector<1x128xf32>
    %338 = arith.mulf %244, %336 : vector<1x128xf32>
    %339 = arith.subf %337, %338 : vector<1x128xf32>
    %340 = arith.mulf %240, %336 : vector<1x128xf32>
    %341 = arith.mulf %244, %333 : vector<1x128xf32>
    %342 = arith.addf %340, %341 : vector<1x128xf32>
    %343 = arith.mulf %248, %333 : vector<1x128xf32>
    %344 = arith.mulf %252, %336 : vector<1x128xf32>
    %345 = arith.subf %343, %344 : vector<1x128xf32>
    %346 = arith.mulf %248, %336 : vector<1x128xf32>
    %347 = arith.mulf %252, %333 : vector<1x128xf32>
    %348 = arith.addf %346, %347 : vector<1x128xf32>
    %349 = arith.mulf %256, %333 : vector<1x128xf32>
    %350 = arith.mulf %260, %336 : vector<1x128xf32>
    %351 = arith.subf %349, %350 : vector<1x128xf32>
    %352 = arith.mulf %256, %336 : vector<1x128xf32>
    %353 = arith.mulf %260, %333 : vector<1x128xf32>
    %354 = arith.addf %352, %353 : vector<1x128xf32>
    %355 = arith.mulf %264, %339 : vector<1x128xf32>
    %356 = arith.mulf %268, %342 : vector<1x128xf32>
    %357 = arith.subf %355, %356 : vector<1x128xf32>
    %358 = arith.subf %272, %357 : vector<1x128xf32>
    %359 = arith.mulf %264, %342 : vector<1x128xf32>
    %360 = arith.mulf %268, %339 : vector<1x128xf32>
    %361 = arith.addf %359, %360 : vector<1x128xf32>
    %362 = arith.subf %276, %361 : vector<1x128xf32>
    %363 = arith.mulf %264, %345 : vector<1x128xf32>
    %364 = arith.mulf %268, %348 : vector<1x128xf32>
    %365 = arith.subf %363, %364 : vector<1x128xf32>
    %366 = arith.subf %280, %365 : vector<1x128xf32>
    %367 = arith.mulf %264, %348 : vector<1x128xf32>
    %368 = arith.mulf %268, %345 : vector<1x128xf32>
    %369 = arith.addf %367, %368 : vector<1x128xf32>
    %370 = arith.subf %284, %369 : vector<1x128xf32>
    %371 = arith.mulf %264, %351 : vector<1x128xf32>
    %372 = arith.mulf %268, %354 : vector<1x128xf32>
    %373 = arith.subf %371, %372 : vector<1x128xf32>
    %374 = arith.subf %288, %373 : vector<1x128xf32>
    %375 = arith.mulf %264, %354 : vector<1x128xf32>
    %376 = arith.mulf %268, %351 : vector<1x128xf32>
    %377 = arith.addf %375, %376 : vector<1x128xf32>
    %378 = arith.subf %292, %377 : vector<1x128xf32>
    %379 = arith.mulf %296, %339 : vector<1x128xf32>
    %380 = arith.mulf %300, %342 : vector<1x128xf32>
    %381 = arith.subf %379, %380 : vector<1x128xf32>
    %382 = arith.subf %304, %381 : vector<1x128xf32>
    %383 = arith.mulf %296, %342 : vector<1x128xf32>
    %384 = arith.mulf %300, %339 : vector<1x128xf32>
    %385 = arith.addf %383, %384 : vector<1x128xf32>
    %386 = arith.subf %308, %385 : vector<1x128xf32>
    %387 = arith.mulf %296, %345 : vector<1x128xf32>
    %388 = arith.mulf %300, %348 : vector<1x128xf32>
    %389 = arith.subf %387, %388 : vector<1x128xf32>
    %390 = arith.subf %312, %389 : vector<1x128xf32>
    %391 = arith.mulf %296, %348 : vector<1x128xf32>
    %392 = arith.mulf %300, %345 : vector<1x128xf32>
    %393 = arith.addf %391, %392 : vector<1x128xf32>
    %394 = arith.subf %316, %393 : vector<1x128xf32>
    %395 = arith.mulf %296, %351 : vector<1x128xf32>
    %396 = arith.mulf %300, %354 : vector<1x128xf32>
    %397 = arith.subf %395, %396 : vector<1x128xf32>
    %398 = arith.subf %320, %397 : vector<1x128xf32>
    %399 = arith.mulf %296, %354 : vector<1x128xf32>
    %400 = arith.mulf %300, %351 : vector<1x128xf32>
    %401 = arith.addf %399, %400 : vector<1x128xf32>
    %402 = arith.subf %324, %401 : vector<1x128xf32>
    %403 = arith.mulf %358, %358 : vector<1x128xf32>
    %404 = arith.mulf %362, %362 : vector<1x128xf32>
    %405 = arith.addf %403, %404 : vector<1x128xf32>
    %406 = tpu.reciprocal %405 {approx = true} : vector<1x128xf32> -> vector<1x128xf32>
    %407 = arith.mulf %405, %406 : vector<1x128xf32>
    %cst_106 = arith.constant 2.000000e+00 : f32
    %408 = vector.broadcast %cst_106 : f32 to vector<1x128xf32>
    %409 = arith.subf %408, %407 : vector<1x128xf32>
    %410 = arith.mulf %406, %409 : vector<1x128xf32>
    %411 = arith.mulf %358, %410 : vector<1x128xf32>
    %cst_107 = arith.constant 0.000000e+00 : f32
    %412 = vector.broadcast %cst_107 : f32 to vector<1x128xf32>
    %413 = arith.subf %412, %362 : vector<1x128xf32>
    %414 = arith.mulf %413, %410 : vector<1x128xf32>
    %415 = arith.mulf %366, %411 : vector<1x128xf32>
    %416 = arith.mulf %370, %414 : vector<1x128xf32>
    %417 = arith.subf %415, %416 : vector<1x128xf32>
    %418 = arith.mulf %366, %414 : vector<1x128xf32>
    %419 = arith.mulf %370, %411 : vector<1x128xf32>
    %420 = arith.addf %418, %419 : vector<1x128xf32>
    %421 = arith.mulf %374, %411 : vector<1x128xf32>
    %422 = arith.mulf %378, %414 : vector<1x128xf32>
    %423 = arith.subf %421, %422 : vector<1x128xf32>
    %424 = arith.mulf %374, %414 : vector<1x128xf32>
    %425 = arith.mulf %378, %411 : vector<1x128xf32>
    %426 = arith.addf %424, %425 : vector<1x128xf32>
    %427 = arith.mulf %382, %417 : vector<1x128xf32>
    %428 = arith.mulf %386, %420 : vector<1x128xf32>
    %429 = arith.subf %427, %428 : vector<1x128xf32>
    %430 = arith.subf %390, %429 : vector<1x128xf32>
    %431 = arith.mulf %382, %420 : vector<1x128xf32>
    %432 = arith.mulf %386, %417 : vector<1x128xf32>
    %433 = arith.addf %431, %432 : vector<1x128xf32>
    %434 = arith.subf %394, %433 : vector<1x128xf32>
    %435 = arith.mulf %382, %423 : vector<1x128xf32>
    %436 = arith.mulf %386, %426 : vector<1x128xf32>
    %437 = arith.subf %435, %436 : vector<1x128xf32>
    %438 = arith.subf %398, %437 : vector<1x128xf32>
    %439 = arith.mulf %382, %426 : vector<1x128xf32>
    %440 = arith.mulf %386, %423 : vector<1x128xf32>
    %441 = arith.addf %439, %440 : vector<1x128xf32>
    %442 = arith.subf %402, %441 : vector<1x128xf32>
    %443 = arith.mulf %430, %430 : vector<1x128xf32>
    %444 = arith.mulf %434, %434 : vector<1x128xf32>
    %445 = arith.addf %443, %444 : vector<1x128xf32>
    %446 = tpu.reciprocal %445 {approx = true} : vector<1x128xf32> -> vector<1x128xf32>
    %447 = arith.mulf %445, %446 : vector<1x128xf32>
    %cst_108 = arith.constant 2.000000e+00 : f32
    %448 = vector.broadcast %cst_108 : f32 to vector<1x128xf32>
    %449 = arith.subf %448, %447 : vector<1x128xf32>
    %450 = arith.mulf %446, %449 : vector<1x128xf32>
    %451 = arith.mulf %430, %450 : vector<1x128xf32>
    %cst_109 = arith.constant 0.000000e+00 : f32
    %452 = vector.broadcast %cst_109 : f32 to vector<1x128xf32>
    %453 = arith.subf %452, %434 : vector<1x128xf32>
    %454 = arith.mulf %453, %450 : vector<1x128xf32>
    %455 = arith.mulf %438, %451 : vector<1x128xf32>
    %456 = arith.mulf %442, %454 : vector<1x128xf32>
    %457 = arith.subf %455, %456 : vector<1x128xf32>
    %458 = arith.mulf %438, %454 : vector<1x128xf32>
    %459 = arith.mulf %442, %451 : vector<1x128xf32>
    %460 = arith.addf %458, %459 : vector<1x128xf32>
    %461 = arith.mulf %219, %457 : vector<1x128xf32>
    %462 = arith.mulf %222, %460 : vector<1x128xf32>
    %463 = arith.subf %461, %462 : vector<1x128xf32>
    %464 = arith.subf %225, %463 : vector<1x128xf32>
    %465 = arith.mulf %219, %460 : vector<1x128xf32>
    %466 = arith.mulf %222, %457 : vector<1x128xf32>
    %467 = arith.addf %465, %466 : vector<1x128xf32>
    %468 = arith.subf %228, %467 : vector<1x128xf32>
    %469 = arith.mulf %345, %457 : vector<1x128xf32>
    %470 = arith.mulf %348, %460 : vector<1x128xf32>
    %471 = arith.subf %469, %470 : vector<1x128xf32>
    %472 = arith.subf %351, %471 : vector<1x128xf32>
    %473 = arith.mulf %345, %460 : vector<1x128xf32>
    %474 = arith.mulf %348, %457 : vector<1x128xf32>
    %475 = arith.addf %473, %474 : vector<1x128xf32>
    %476 = arith.subf %354, %475 : vector<1x128xf32>
    %477 = arith.mulf %417, %457 : vector<1x128xf32>
    %478 = arith.mulf %420, %460 : vector<1x128xf32>
    %479 = arith.subf %477, %478 : vector<1x128xf32>
    %480 = arith.subf %423, %479 : vector<1x128xf32>
    %481 = arith.mulf %417, %460 : vector<1x128xf32>
    %482 = arith.mulf %420, %457 : vector<1x128xf32>
    %483 = arith.addf %481, %482 : vector<1x128xf32>
    %484 = arith.subf %426, %483 : vector<1x128xf32>
    %485 = arith.mulf %213, %480 : vector<1x128xf32>
    %486 = arith.mulf %216, %484 : vector<1x128xf32>
    %487 = arith.subf %485, %486 : vector<1x128xf32>
    %488 = arith.subf %464, %487 : vector<1x128xf32>
    %489 = arith.mulf %213, %484 : vector<1x128xf32>
    %490 = arith.mulf %216, %480 : vector<1x128xf32>
    %491 = arith.addf %489, %490 : vector<1x128xf32>
    %492 = arith.subf %468, %491 : vector<1x128xf32>
    %493 = arith.mulf %339, %480 : vector<1x128xf32>
    %494 = arith.mulf %342, %484 : vector<1x128xf32>
    %495 = arith.subf %493, %494 : vector<1x128xf32>
    %496 = arith.subf %472, %495 : vector<1x128xf32>
    %497 = arith.mulf %339, %484 : vector<1x128xf32>
    %498 = arith.mulf %342, %480 : vector<1x128xf32>
    %499 = arith.addf %497, %498 : vector<1x128xf32>
    %500 = arith.subf %476, %499 : vector<1x128xf32>
    %501 = arith.mulf %207, %496 : vector<1x128xf32>
    %502 = arith.mulf %210, %500 : vector<1x128xf32>
    %503 = arith.subf %501, %502 : vector<1x128xf32>
    %504 = arith.subf %488, %503 : vector<1x128xf32>
    %505 = arith.mulf %207, %500 : vector<1x128xf32>
    %506 = arith.mulf %210, %496 : vector<1x128xf32>
    %507 = arith.addf %505, %506 : vector<1x128xf32>
    %508 = arith.subf %492, %507 : vector<1x128xf32>
    %509 = arith.mulf %185, %504 : vector<1x128xf32>
    %510 = arith.mulf %189, %508 : vector<1x128xf32>
    %511 = arith.addf %509, %510 : vector<1x128xf32>
    %512 = arith.mulf %185, %508 : vector<1x128xf32>
    %513 = arith.mulf %189, %504 : vector<1x128xf32>
    %514 = arith.subf %512, %513 : vector<1x128xf32>
    %515 = arith.mulf %186, %496 : vector<1x128xf32>
    %516 = arith.addf %511, %515 : vector<1x128xf32>
    %517 = arith.mulf %190, %500 : vector<1x128xf32>
    %518 = arith.addf %516, %517 : vector<1x128xf32>
    %519 = arith.mulf %186, %500 : vector<1x128xf32>
    %520 = arith.addf %514, %519 : vector<1x128xf32>
    %521 = arith.mulf %190, %496 : vector<1x128xf32>
    %522 = arith.subf %520, %521 : vector<1x128xf32>
    %523 = arith.mulf %187, %480 : vector<1x128xf32>
    %524 = arith.addf %518, %523 : vector<1x128xf32>
    %525 = arith.mulf %191, %484 : vector<1x128xf32>
    %526 = arith.addf %524, %525 : vector<1x128xf32>
    %527 = arith.mulf %187, %484 : vector<1x128xf32>
    %528 = arith.addf %522, %527 : vector<1x128xf32>
    %529 = arith.mulf %191, %480 : vector<1x128xf32>
    %530 = arith.subf %528, %529 : vector<1x128xf32>
    %531 = arith.mulf %188, %457 : vector<1x128xf32>
    %532 = arith.addf %526, %531 : vector<1x128xf32>
    %533 = arith.mulf %192, %460 : vector<1x128xf32>
    %534 = arith.addf %532, %533 : vector<1x128xf32>
    %535 = arith.mulf %188, %460 : vector<1x128xf32>
    %536 = arith.addf %530, %535 : vector<1x128xf32>
    %537 = arith.mulf %192, %457 : vector<1x128xf32>
    %538 = arith.subf %536, %537 : vector<1x128xf32>
    %539 = arith.mulf %534, %534 : vector<1x128xf32>
    %540 = arith.mulf %538, %538 : vector<1x128xf32>
    %541 = arith.addf %539, %540 : vector<1x128xf32>
    %542 = tpu.reciprocal %541 {approx = true} : vector<1x128xf32> -> vector<1x128xf32>
    %543 = arith.mulf %541, %542 : vector<1x128xf32>
    %cst_110 = arith.constant 2.000000e+00 : f32
    %544 = vector.broadcast %cst_110 : f32 to vector<1x128xf32>
    %545 = arith.subf %544, %543 : vector<1x128xf32>
    %546 = arith.mulf %542, %545 : vector<1x128xf32>
    %547 = arith.mulf %534, %546 : vector<1x128xf32>
    %cst_111 = arith.constant 0.000000e+00 : f32
    %548 = vector.broadcast %cst_111 : f32 to vector<1x128xf32>
    %549 = arith.subf %548, %538 : vector<1x128xf32>
    %550 = arith.mulf %549, %546 : vector<1x128xf32>
    %551 = arith.mulf %504, %547 : vector<1x128xf32>
    %552 = arith.mulf %508, %550 : vector<1x128xf32>
    %553 = arith.subf %551, %552 : vector<1x128xf32>
    %554 = arith.mulf %496, %547 : vector<1x128xf32>
    %555 = arith.mulf %500, %550 : vector<1x128xf32>
    %556 = arith.subf %554, %555 : vector<1x128xf32>
    %557 = arith.mulf %480, %547 : vector<1x128xf32>
    %558 = arith.mulf %484, %550 : vector<1x128xf32>
    %559 = arith.subf %557, %558 : vector<1x128xf32>
    %560 = arith.mulf %457, %547 : vector<1x128xf32>
    %561 = arith.mulf %460, %550 : vector<1x128xf32>
    %562 = arith.subf %560, %561 : vector<1x128xf32>
    %563 = arith.mulf %504, %550 : vector<1x128xf32>
    %564 = arith.mulf %508, %547 : vector<1x128xf32>
    %565 = arith.addf %563, %564 : vector<1x128xf32>
    %566 = arith.mulf %496, %550 : vector<1x128xf32>
    %567 = arith.mulf %500, %547 : vector<1x128xf32>
    %568 = arith.addf %566, %567 : vector<1x128xf32>
    %569 = arith.mulf %480, %550 : vector<1x128xf32>
    %570 = arith.mulf %484, %547 : vector<1x128xf32>
    %571 = arith.addf %569, %570 : vector<1x128xf32>
    %572 = arith.mulf %457, %550 : vector<1x128xf32>
    %573 = arith.mulf %460, %547 : vector<1x128xf32>
    %574 = arith.addf %572, %573 : vector<1x128xf32>
    %575 = vector.shape_cast %553 : vector<1x128xf32> to vector<1x128xf32>
    %576 = vector.broadcast %575 : vector<1x128xf32> to vector<8x128xf32>
    %577 = vector.shape_cast %556 : vector<1x128xf32> to vector<1x128xf32>
    %578 = vector.broadcast %577 : vector<1x128xf32> to vector<8x128xf32>
    %579 = vector.shape_cast %559 : vector<1x128xf32> to vector<1x128xf32>
    %580 = vector.broadcast %579 : vector<1x128xf32> to vector<8x128xf32>
    %581 = vector.shape_cast %562 : vector<1x128xf32> to vector<1x128xf32>
    %582 = vector.broadcast %581 : vector<1x128xf32> to vector<8x128xf32>
    %583 = vector.shape_cast %565 : vector<1x128xf32> to vector<1x128xf32>
    %584 = vector.broadcast %583 : vector<1x128xf32> to vector<8x128xf32>
    %585 = vector.shape_cast %568 : vector<1x128xf32> to vector<1x128xf32>
    %586 = vector.broadcast %585 : vector<1x128xf32> to vector<8x128xf32>
    %587 = vector.shape_cast %571 : vector<1x128xf32> to vector<1x128xf32>
    %588 = vector.broadcast %587 : vector<1x128xf32> to vector<8x128xf32>
    %589 = vector.shape_cast %574 : vector<1x128xf32> to vector<1x128xf32>
    %590 = vector.broadcast %589 : vector<1x128xf32> to vector<8x128xf32>
    %c0_112 = arith.constant 0 : index
    %c0_113 = arith.constant 0 : index
    %c0_114 = arith.constant 0 : index
    %c0_115 = arith.constant 0 : index
    %c0_116 = arith.constant 0 : index
    %591 = vector.load %arg3[%c0_112, %c0_113, %c0_114, %c0_115, %c0_116] : memref<1x2x4x8x128xf32, #tpu.memory_space<vmem>>, vector<1x1x1x8x128xf32>
    %592 = vector.shape_cast %591 : vector<1x1x1x8x128xf32> to vector<8x128xf32>
    %c0_117 = arith.constant 0 : index
    %c1_118 = arith.constant 1 : index
    %c0_119 = arith.constant 0 : index
    %c0_120 = arith.constant 0 : index
    %c0_121 = arith.constant 0 : index
    %593 = vector.load %arg3[%c0_117, %c1_118, %c0_119, %c0_120, %c0_121] : memref<1x2x4x8x128xf32, #tpu.memory_space<vmem>>, vector<1x1x1x8x128xf32>
    %594 = vector.shape_cast %593 : vector<1x1x1x8x128xf32> to vector<8x128xf32>
    %595 = arith.mulf %576, %592 : vector<8x128xf32>
    %596 = arith.mulf %584, %594 : vector<8x128xf32>
    %597 = arith.addf %595, %596 : vector<8x128xf32>
    %598 = arith.mulf %576, %594 : vector<8x128xf32>
    %599 = arith.mulf %584, %592 : vector<8x128xf32>
    %600 = arith.subf %598, %599 : vector<8x128xf32>
    %c0_122 = arith.constant 0 : index
    %c0_123 = arith.constant 0 : index
    %c1_124 = arith.constant 1 : index
    %c0_125 = arith.constant 0 : index
    %c0_126 = arith.constant 0 : index
    %601 = vector.load %arg3[%c0_122, %c0_123, %c1_124, %c0_125, %c0_126] : memref<1x2x4x8x128xf32, #tpu.memory_space<vmem>>, vector<1x1x1x8x128xf32>
    %602 = vector.shape_cast %601 : vector<1x1x1x8x128xf32> to vector<8x128xf32>
    %c0_127 = arith.constant 0 : index
    %c1_128 = arith.constant 1 : index
    %c1_129 = arith.constant 1 : index
    %c0_130 = arith.constant 0 : index
    %c0_131 = arith.constant 0 : index
    %603 = vector.load %arg3[%c0_127, %c1_128, %c1_129, %c0_130, %c0_131] : memref<1x2x4x8x128xf32, #tpu.memory_space<vmem>>, vector<1x1x1x8x128xf32>
    %604 = vector.shape_cast %603 : vector<1x1x1x8x128xf32> to vector<8x128xf32>
    %605 = arith.mulf %578, %602 : vector<8x128xf32>
    %606 = arith.mulf %586, %604 : vector<8x128xf32>
    %607 = arith.addf %605, %606 : vector<8x128xf32>
    %608 = arith.mulf %578, %604 : vector<8x128xf32>
    %609 = arith.mulf %586, %602 : vector<8x128xf32>
    %610 = arith.subf %608, %609 : vector<8x128xf32>
    %611 = arith.addf %597, %607 : vector<8x128xf32>
    %612 = arith.addf %600, %610 : vector<8x128xf32>
    %c0_132 = arith.constant 0 : index
    %c0_133 = arith.constant 0 : index
    %c2_134 = arith.constant 2 : index
    %c0_135 = arith.constant 0 : index
    %c0_136 = arith.constant 0 : index
    %613 = vector.load %arg3[%c0_132, %c0_133, %c2_134, %c0_135, %c0_136] : memref<1x2x4x8x128xf32, #tpu.memory_space<vmem>>, vector<1x1x1x8x128xf32>
    %614 = vector.shape_cast %613 : vector<1x1x1x8x128xf32> to vector<8x128xf32>
    %c0_137 = arith.constant 0 : index
    %c1_138 = arith.constant 1 : index
    %c2_139 = arith.constant 2 : index
    %c0_140 = arith.constant 0 : index
    %c0_141 = arith.constant 0 : index
    %615 = vector.load %arg3[%c0_137, %c1_138, %c2_139, %c0_140, %c0_141] : memref<1x2x4x8x128xf32, #tpu.memory_space<vmem>>, vector<1x1x1x8x128xf32>
    %616 = vector.shape_cast %615 : vector<1x1x1x8x128xf32> to vector<8x128xf32>
    %617 = arith.mulf %580, %614 : vector<8x128xf32>
    %618 = arith.mulf %588, %616 : vector<8x128xf32>
    %619 = arith.addf %617, %618 : vector<8x128xf32>
    %620 = arith.mulf %580, %616 : vector<8x128xf32>
    %621 = arith.mulf %588, %614 : vector<8x128xf32>
    %622 = arith.subf %620, %621 : vector<8x128xf32>
    %623 = arith.addf %611, %619 : vector<8x128xf32>
    %624 = arith.addf %612, %622 : vector<8x128xf32>
    %c0_142 = arith.constant 0 : index
    %c0_143 = arith.constant 0 : index
    %c3_144 = arith.constant 3 : index
    %c0_145 = arith.constant 0 : index
    %c0_146 = arith.constant 0 : index
    %625 = vector.load %arg3[%c0_142, %c0_143, %c3_144, %c0_145, %c0_146] : memref<1x2x4x8x128xf32, #tpu.memory_space<vmem>>, vector<1x1x1x8x128xf32>
    %626 = vector.shape_cast %625 : vector<1x1x1x8x128xf32> to vector<8x128xf32>
    %c0_147 = arith.constant 0 : index
    %c1_148 = arith.constant 1 : index
    %c3_149 = arith.constant 3 : index
    %c0_150 = arith.constant 0 : index
    %c0_151 = arith.constant 0 : index
    %627 = vector.load %arg3[%c0_147, %c1_148, %c3_149, %c0_150, %c0_151] : memref<1x2x4x8x128xf32, #tpu.memory_space<vmem>>, vector<1x1x1x8x128xf32>
    %628 = vector.shape_cast %627 : vector<1x1x1x8x128xf32> to vector<8x128xf32>
    %629 = arith.mulf %582, %626 : vector<8x128xf32>
    %630 = arith.mulf %590, %628 : vector<8x128xf32>
    %631 = arith.addf %629, %630 : vector<8x128xf32>
    %632 = arith.mulf %582, %628 : vector<8x128xf32>
    %633 = arith.mulf %590, %626 : vector<8x128xf32>
    %634 = arith.subf %632, %633 : vector<8x128xf32>
    %635 = arith.addf %623, %631 : vector<8x128xf32>
    %636 = arith.addf %624, %634 : vector<8x128xf32>
    %c0_152 = arith.constant 0 : index
    %c0_153 = arith.constant 0 : index
    %c0_154 = arith.constant 0 : index
    %c0_155 = arith.constant 0 : index
    %637 = vector.load %arg5[%c0_152, %c0_153, %c0_154, %c0_155] : memref<1x2x8x128xf32, #tpu.memory_space<vmem>>, vector<1x1x8x128xf32>
    %638 = vector.shape_cast %637 : vector<1x1x8x128xf32> to vector<8x128xf32>
    %639 = vector.shape_cast %635 : vector<8x128xf32> to vector<1x1x8x128xf32>
    tpu.vector_store %arg5[%c0_152, %c0_153, %c0_154, %c0_155], %639 {strides = array<i32>} : memref<1x2x8x128xf32, #tpu.memory_space<vmem>>, vector<1x1x8x128xf32>,
    %c0_156 = arith.constant 0 : index
    %c1_157 = arith.constant 1 : index
    %c0_158 = arith.constant 0 : index
    %c0_159 = arith.constant 0 : index
    %640 = vector.load %arg5[%c0_156, %c1_157, %c0_158, %c0_159] : memref<1x2x8x128xf32, #tpu.memory_space<vmem>>, vector<1x1x8x128xf32>
    %641 = vector.shape_cast %640 : vector<1x1x8x128xf32> to vector<8x128xf32>
    %642 = vector.shape_cast %636 : vector<8x128xf32> to vector<1x1x8x128xf32>
    tpu.vector_store %arg5[%c0_156, %c1_157, %c0_158, %c0_159], %642 {strides = array<i32>} : memref<1x2x8x128xf32, #tpu.memory_space<vmem>>, vector<1x1x8x128xf32>,
    return
  }
  func.func @transform_0(%arg0: i32, %arg1: i32) -> (i32, i32, i32, i32, i32) {
    %c0_i32 = arith.constant 0 : i32
    %c0_i32_0 = arith.constant 0 : i32
    %c0_i32_1 = arith.constant 0 : i32
    %c0_i32_2 = arith.constant 0 : i32
    return %arg0, %c0_i32, %c0_i32_0, %c0_i32_1, %arg1 : i32, i32, i32, i32, i32
  }
  func.func @transform_1(%arg0: i32, %arg1: i32) -> (i32, i32, i32, i32, i32) {
    %c0_i32 = arith.constant 0 : i32
    %c0_i32_0 = arith.constant 0 : i32
    %c0_i32_1 = arith.constant 0 : i32
    %c0_i32_2 = arith.constant 0 : i32
    return %arg0, %c0_i32, %c0_i32_0, %c0_i32_1, %arg1 : i32, i32, i32, i32, i32
  }
  func.func @transform_2(%arg0: i32, %arg1: i32) -> (i32, i32, i32, i32) {
    %c0_i32 = arith.constant 0 : i32
    %c0_i32_0 = arith.constant 0 : i32
    %c0_i32_1 = arith.constant 0 : i32
    return %arg0, %c0_i32, %c0_i32_0, %arg1 : i32, i32, i32, i32
  }
  func.func @transform_3(%arg0: i32, %arg1: i32) -> (i32, i32, i32, i32) {
    %c0_i32 = arith.constant 0 : i32
    %c0_i32_0 = arith.constant 0 : i32
    %c0_i32_1 = arith.constant 0 : i32
    return %arg0, %c0_i32, %c0_i32_0, %arg1 : i32, i32, i32, i32
  }
}

</mosaic_0001>

<bundles_post_ra>
// kernel: tpu_custom_call.1
= control target key start
LH: loop header
LB: loop body
LE: loop exit
PB: predicated region body
PF: predicated region fallthrough
CT: control target
= control target key end

     0   :  { %s2272_s0 = inlined_call_operand.hbm [shape: f32[2,2,4,8,128], index: 0, kind: input, shape index: {}]   ;;  %s2273_s1 = inlined_call_operand.hbm [shape: f32[2,2,4,8,128], index: 1, kind: input, shape index: {}]   ;;  %s2274_s2 = inlined_call_operand.hbm [shape: f32[2,2,4,128], index: 2, kind: input, shape index: {}]   ;;  %s2275_s3 = inlined_call_operand.hbm [shape: f32[2,2,8,128], index: 3, kind: output, shape index: {}]  }
   0x1   :  { %2295 = sst [smem:[#allocation26_spill]] %s2273_s1 }
   0x2   :  { %8 = vsyncpa [#allocation3], 0 }
   0x3   :  { %10 = vsyncpa [#allocation3 + $0x1], 0 }
   0x4   :  { %11 = vsyncpa [#allocation6], 0 }
   0x5   :  { %13 = vsyncpa [#allocation6 + $0x1], 0 }
   0x6   :  { %14 = vsyncpa [#allocation4], 0 }
   0x7   :  { %16 = vsyncpa [#allocation4 + $0x1], 0  ;;  %s1543_s12 = smov 0   ;;  %s1545_s13 = smov 0  }
   0x8   :  { %s1547_s14 = smov 0   ;;  %s1549_s15 = smov 0  }
   0x9   :  { %s1551_s16 = smov 0   ;;  %s1553_s17 = smov 0  }
   0xa LB: > { %2296 = sst [smem:[#allocation12_spill]] %s1499_s14  ;;  %s1574_s18 = sadd.s32 4294967295, %s1511_s17   ;;  %s1511_s17 = sphi %s1553_s17, %s22_s17   ;;  %s1507_s16 = sphi %s1551_s16, %s2341_s16   ;;  %s1503_s15 = sphi %s1549_s15, %s2340_s15   ;;  %s1499_s14 = sphi %s1547_s14, %s2336_s14   ;;  %s1495_s13 = sphi %s1545_s13, %s2339_s13   ;;  %s1491_s12 = sphi %s1543_s12, %s2338_s12  }
   0xb   : > { %s1213_s19 = sadd.s32 4294967294, %s1511_s17   ;;  %s34_s20 = sadd.s32 1, %s1507_s16 }
   0xc   : > { %s43_s21 = sadd.s32 1, %s1499_s14  ;;  %p36_p0 = scmp.ge.s32.totalorder %s34_s20, 2 }
   0xd   : > { %p50_p1 = scmp.ne.s32.totalorder %s1499_s14, %s1495_s13  ;;  %p51_p2 = scmp.eq.s32.totalorder %s1511_s17, 0 }
   0xe   : > { %p56_p3 = scmp.ne.s32.totalorder %s1495_s13, %s1491_s12  ;;  %s2343_s20 = smov (%p36_p0, %s34_s20), 0 }
   0xf   : > { %2297 = sst [smem:[#allocation13_spill]] %s2343_s20  ;;  %p1586_p4 = por %p51_p2, %p50_p1 }
  0x10   : > { %p57_p5 = scmp.eq.s32.totalorder %s1574_s18, 0  ;;  %s38_s23 = ssub.s32 %s1507_s16, %s2343_s20 }
  0x11   : > { %p138_p6 = scmp.eq.s32.totalorder %s1574_s18, 1  ;;  %p41_p7 = scmp.eq.s32.totalorder %s38_s23, 0 }
  0x12   : > { %p1594_p8 = por %p57_p5, %p56_p3  ;;  %p144_p10 = scmp.eq.s32.totalorder %s1213_s19, 1 }
  0x13   : > { %p1598_p9 = por %p138_p6, %p50_p1  ;;  %p1277_p13 = scmp.lt.s32.totalorder %s1511_s17, 2 }
  0x14   : > { %s1603_s26 = scalar_select %p41_p7, %s1499_s14, %s43_s21  }
  0x15   : > { %p1605_p11 = por %p144_p10, %p56_p3  ;;  %s1612_s28 = sand.u32 1, %s1499_s14  }
  0x16   : > { %2301 = sst [smem:[#allocation14_spill]] %s1603_s26  ;;  %s1216_s29 = sshll.u32 %s1612_s28, 6 }
  0x17   : > { %s1251_s30 = sshll.u32 %s1507_s16, 10  ;;  %p1618_p0 = pnand %p1277_p13, %p1586_p4 }
  0x18   : > { %s186_s5 = sand.u32 1, %s1511_s17   ;;  %s2304_s1 = sld [smem:[#allocation26_spill]] }
  0x19   : > { %s190_s9 = scalar_lea.vmem [#allocation5], %s1216_s29  ;;  %p1225_p1 = scmp.ge.s32.totalorder %s1511_s17, 1 }
  0x1a   : > { %s198_s10 = sshll.u32 %s190_s9, 4  ;;  %p228_p2 = scmp.lt.s32.totalorder %s1511_s17, 3  ;;  %s199_s10 = int_to_ptr.vmem [resolvable:$true] %s198_s10 }
  0x1b   : > { %s1632_s11 = scalar_lea.sflag [#allocation6], %s186_s5  ;;  %p1345_p3 = pneg %p1618_p0 }
  0x1c   : > { %s1356_s19 = scalar_lea.vmem %s199_s10, 1024  ;;  %s1513_s21 = smov [#allocation5]  }
  0x1d   : > { %p1357_p4 = scmp.ne.s32.totalorder %s199_s10, %s1356_s19  ;;  %s1361_s22 = sshll.u32 %s1513_s21, 4  ;;  %s1362_s22 = int_to_ptr.vmem [resolvable:$false] %s1361_s22 }
  0x1e   : > { %s197_s8 = scalar_lea.hbm %s2304_s1, %s1251_s30  ;;  %s1363_s23 = scalar_lea.vmem %s1362_s22, 2048 }
  0x1f   : > { %p1359_p5 = pnand %p1357_p4, %p1345_p3  ;;  %p1364_p7 = scmp.lt.s32.totalorder %s199_s10, %s1362_s22 }
  0x20   : > { %p1365_p10 = scmp.lt.s32.totalorder %s1363_s23, %s1356_s19 }
  0x21   : > { %p1360_p6 = pneg %p1359_p5 }
  0x22   : > { %p1366_p13 = por %p1365_p10, %p1364_p7 }
  0x24   : > { %p1367_p12 = pnand %p1366_p13, %p1360_p6 }
  0x26   : > { %1370 = shalt.err (!%p1367_p12)
}
  0x27   : > { %s1514_s6 = smov 128   ;;  %s1515_s5 = smov 8  }
  0x28   : > { %1269 = dma.hbm_to_vmem [thread:$0]  (!%p1618_p0), %s197_s8, 1024, %s199_s10, %s1632_s11, %s1514_s6, %s1514_s6, %s1515_s5  }
  0x29   : > { %p1646_p4 = pnand %p1225_p1, %p228_p2  ;;  %s175_s21 = scalar_lea.hbm %s2272_s0, %s1251_s30 }
  0x2a   : > { %s168_s22 = scalar_lea.vmem [#allocation2], %s1216_s29  ;;  %s1222_s1 = sshll.u32 %s1612_s28, 3 }
  0x2b   : > { %s176_s23 = sshll.u32 %s168_s22, 4  ;;  %s165_s20 = scalar_lea.sflag [#allocation3], %s1612_s28  ;;  %s177_s23 = int_to_ptr.vmem [resolvable:$true] %s176_s23 }
  0x2c   : > { %s1384_s26 = scalar_lea.vmem %s177_s23, 1024  ;;  %s1516_s8 = smov [#allocation2]  }
  0x2d   : > { %p1385_p12 = scmp.ne.s32.totalorder %s177_s23, %s1384_s26  ;;  %s1389_s10 = sshll.u32 %s1516_s8, 4  ;;  %s1390_s10 = int_to_ptr.vmem [resolvable:$false] %s1389_s10 }
  0x2e   : > { %s1391_s14 = scalar_lea.vmem %s1390_s10, 2048  ;;  %p1392_p2 = scmp.lt.s32.totalorder %s177_s23, %s1390_s10 }
  0x2f   : > { %p1387_p5 = pnand %p1385_p12, %p1345_p3  ;;  %p1393_p6 = scmp.lt.s32.totalorder %s1391_s14, %s1384_s26 }
  0x31   : > { %p1388_p1 = pneg %p1387_p5  ;;  %p1394_p7 = por %p1393_p6, %p1392_p2 }
  0x33   : > { %p1395_p10 = pnand %p1394_p7, %p1388_p1 }
  0x35   : > { %1398 = shalt.err (!%p1395_p10)
}
  0x36   : > { %1266 = dma.hbm_to_vmem [thread:$0]  (!%p1618_p0), %s175_s21, 1024, %s177_s23, %s165_s20, %s1514_s6, %s1514_s6, %s1515_s5  }
  0x37   : > { %s1253_s28 = sshll.u32 %s1507_s16, 7  ;;  %s212_s29 = scalar_lea.vmem [#allocation7], %s1222_s1 }
  0x38   : > { %s220_s30 = sshll.u32 %s212_s29, 4  ;;  %s219_s22 = scalar_lea.hbm %s2274_s2, %s1253_s28  ;;  %s221_s30 = int_to_ptr.vmem [resolvable:$true] %s220_s30 }
  0x39   : > { %s1412_s8 = scalar_lea.vmem %s221_s30, 128  ;;  %s1517_s14 = smov [#allocation7]  }
  0x3a   : > { %p1413_p13 = scmp.ne.s32.totalorder %s221_s30, %s1412_s8  ;;  %s1417_s26 = sshll.u32 %s1517_s14, 4  ;;  %s1418_s26 = int_to_ptr.vmem [resolvable:$false] %s1417_s26 }
  0x3b   : > { %s1419_s10 = scalar_lea.vmem %s1418_s26, 256  ;;  %p1420_p1 = scmp.lt.s32.totalorder %s221_s30, %s1418_s26 }
  0x3c   : > { %p1415_p12 = pnand %p1413_p13, %p1345_p3  ;;  %p1421_p2 = scmp.lt.s32.totalorder %s1419_s10, %s1412_s8 }
  0x3e   : > { %p1416_p5 = pneg %p1415_p12  ;;  %p1422_p6 = por %p1421_p2, %p1420_p1 }
  0x40   : > { %p1423_p7 = pnand %p1422_p6, %p1416_p5 }
  0x42   : > { %1426 = shalt.err (!%p1423_p7)
}
  0x43   : > { %s1518_s1 = smov 64   ;;  %s1519_s20 = smov 4  }
  0x44   : > { %1272 = dma.hbm_to_vmem [thread:$0]  (!%p1618_p0), %s219_s22, 128, %s221_s30, %s1632_s11, %s1518_s1, %s1518_s1, %s1519_s20  }
  0x45   : > { %232 = sbr.rel (%p1646_p4) target bundleno = 359 (0x167), region = 32 }
  0x4a   : > { %s1677_s6 = sand.u32 1, %s1495_s13  }
  0x4b   : > { %s1226_s5 = sshll.u32 %s1677_s6, 6  ;;  %s235_s21 = scalar_lea.sflag [#allocation3], %s1677_s6 }
  0x4c   : > { %s1681_s23 = scalar_lea.vmem [#allocation2], %s1226_s5 }
  0x4d   : > { %1478 = dma.done.wait (%p1594_p8), %s235_s21, 1024  }
  0x4e   : > { %1480 = vsyncadd (%p1594_p8), %s235_s21, 4294966272  ;;  %s243_s4 = sand.u32 1, %s1574_s18   ;;  %s1688_s7 = scalar_lea.vmem [#allocation5], %s1226_s5 }
  0x4f   : > { %s244_s11 = scalar_lea.sflag [#allocation6], %s243_s4 }
  0x50   : > { %1482 = dma.done.wait (%p1594_p8), %s244_s11, 1152  }
  0x51   : > { %1484 = vsyncadd (%p1594_p8), %s244_s11, 4294966144  ;;  %v289_v0 = vld [vmem:[%s1681_s23] sm:$0xff]  ;;  %v1697_v2 = vld [vmem:[%s1681_s23 + $0x18] sm:$0xff]  ;;  %s1228_s18 = sshll.u32 %s1677_s6, 3  ;;  %s1229_s28 = sshll.u32 %s1677_s6, 4 }
  0x52   : > { %v1230_v1 = vld [vmem:[%s1681_s23 + $0x20] sm:$0xff]  ;;  %v1700_v3 = vld [vmem:[%s1681_s23 + $0x38] sm:$0xff]  ;;  %v304_v4 = vmul.f32 %v289_v0, %v289_v0  ;;  %v354_v6 = vmul.f32 %v1697_v2, %v289_v0  ;;  %v1707_v20 = vld [vmem:[%s1681_s23 + $0x8] sm:$0xff]  ;;  %s256_s24 = scalar_lea.vmem [#allocation7], %s1228_s18  ;;  %s1254_s29 = sshll.u32 %s1503_s15, 8 }
  0x53   : > { %v305_v5 = vmul.f32 %v1230_v1, %v1230_v1  ;;  %v355_v7 = vmul.f32 %v1700_v3, %v1230_v1  ;;  %v363_v8 = vmul.f32 %v1697_v2, %v1230_v1  ;;  %v364_v9 = vmul.f32 %v1700_v3, %v289_v0  ;;  %v1710_v21 = vld [vmem:[%s1681_s23 + $0x28] sm:$0xff]  ;;  %v1713_v22 = vld [vmem:[%s1681_s23 + $0x10] sm:$0xff]  ;;  %s288_s30 = scalar_lea.vmem [#allocation8], %s1229_s28  ;;  %s2222_s8 = scalar_lea.hbm %s2275_s3, %s1254_s29 }
  0x54   : > { %v1716_v23 = vld [vmem:[%s1681_s23 + $0x30] sm:$0xff]  ;;  %v314_v24 = vmul.f32 %v1707_v20, %v289_v0  ;;  %v323_v25 = vmul.f32 %v1707_v20, %v1230_v1  ;;  %v315_v27 = vmul.f32 %v1710_v21, %v1230_v1  ;;  %v324_v28 = vmul.f32 %v1710_v21, %v289_v0  ;;  %s1080_s9 = sshll.u32 %s288_s30, 4  ;;  %s1066_s15 = scalar_lea.sflag [#allocation4], %s1677_s6  ;;  %s2224_s9 = int_to_ptr.vmem [resolvable:$true] %s1080_s9 }
  0x55   : > { %v306_v10 = vadd.f32 %v305_v5, %v304_v4  ;;  %v356_v11 = vadd.f32 %v355_v7, %v354_v6  ;;  %v365_v12 = vsub.f32 %v363_v8, %v364_v9  ;;  %v334_v29 = vmul.f32 %v1713_v22, %v289_v0  ;;  %s1427_s14 = scalar_lea.vmem %s2224_s9, 256  ;;  %s1520_s26 = smov [#allocation8]  }
  0x56   : > { %v335_v30 = vmul.f32 %v1716_v23, %v1230_v1  ;;  %v343_v31 = vmul.f32 %v1713_v22, %v1230_v1  ;;  %v344_v32 = vmul.f32 %v1716_v23, %v289_v0  ;;  %v316_v36 = vadd.f32 %v315_v27, %v314_v24  ;;  %p1428_p8 = scmp.ne.s32.totalorder %s2224_s9, %s1427_s14  ;;  %s1431_s10 = sshll.u32 %s1520_s26, 4  ;;  %s1432_s10 = int_to_ptr.vmem [resolvable:$false] %s1431_s10 }
  0x57   : > { %v307_v13 = vrot.slane %v306_v10, 4  ;;  %v357_v33 = vrot.slane %v356_v11, 4  ;;  %v366_v34 = vrot.slane %v365_v12, 4  ;;  %v325_v37 = vsub.f32 %v323_v25, %v324_v28  ;;  %s1433_s1 = scalar_lea.vmem %s1432_s10, 512  ;;  %p1434_p4 = scmp.lt.s32.totalorder %s2224_s9, %s1432_s10 }
  0x58   : > { %v336_v38 = vadd.f32 %v335_v30, %v334_v29  ;;  %v345_v39 = vsub.f32 %v343_v31, %v344_v32  ;;  %v374_v40 = vmul.f32 %v1707_v20, %v1707_v20  ;;  %v375_v41 = vmul.f32 %v1710_v21, %v1710_v21  ;;  %p1429_p0 = pnand %p1428_p8, %p1598_p9  ;;  %p1435_p10 = scmp.lt.s32.totalorder %s1433_s1, %s1427_s14 }
  0x59   : > { %v308_v14 = vadd.f32 %v307_v13, %v306_v10  ;;  %v358_v43 = vadd.f32 %v357_v33, %v356_v11  ;;  %v367_v44 = vadd.f32 %v366_v34, %v365_v12  ;;  %v317_v45 = vrot.slane %v316_v36, 4 }
  0x5a   : > { %v326_v46 = vrot.slane %v325_v37, 4  ;;  %v337_v47 = vrot.slane %v336_v38, 4  ;;  %v346_v48 = vrot.slane %v345_v39, 4  ;;  %v376_v49 = vadd.f32 %v375_v41, %v374_v40  ;;  %p1430_p3 = pneg %p1429_p0  ;;  %p1436_p13 = por %p1435_p10, %p1434_p4 }
  0x5b   : > { %v309_v15 = vrot.slane %v308_v14, 2  ;;  %v359_v50 = vrot.slane %v358_v43, 2  ;;  %v368_v51 = vrot.slane %v367_v44, 2  ;;  %v318_v52 = vadd.f32 %v317_v45, %v316_v36 }
  0x5c   : > { %v327_v53 = vadd.f32 %v326_v46, %v325_v37  ;;  %v338_v54 = vadd.f32 %v337_v47, %v336_v38  ;;  %v347_v55 = vadd.f32 %v346_v48, %v345_v39  ;;  %v377_v56 = vrot.slane %v376_v49, 4  ;;  %p1437_p12 = pnand %p1436_p13, %p1430_p3 }
  0x5d   : > { %v310_v16 = vadd.f32 %v309_v15, %v308_v14  ;;  %v360_v57 = vadd.f32 %v359_v50, %v358_v43  ;;  %v369_v58 = vadd.f32 %v368_v51, %v367_v44  ;;  %v319_v59 = vrot.slane %v318_v52, 2  ;;  %v1766_v50 = vld [vmem:[%s256_s24 + $0x4] sm:$0xf] }
  0x5e   : > { %v328_v60 = vrot.slane %v327_v53, 2  ;;  %v339_v61 = vrot.slane %v338_v54, 2  ;;  %v348_v62 = vrot.slane %v347_v55, 2  ;;  %v378_v63 = vadd.f32 %v377_v56, %v376_v49  ;;  %v1764_v49 = vld [vmem:[%s256_s24] sm:$0xf] }
  0x5f   : > { %v311_v17 = vrot.slane %v310_v16, 1  ;;  %v361_v0 = vrot.slane %v360_v57, 1  ;;  %v370_v1 = vrot.slane %v369_v58, 1  ;;  %v320_v5 = vadd.f32 %v319_v59, %v318_v52 }
  0x60   : > { %v329_v6 = vadd.f32 %v328_v60, %v327_v53  ;;  %v384_v7 = vmul.f32 %v1713_v22, %v1707_v20  ;;  %v385_v8 = vmul.f32 %v1716_v23, %v1710_v21  ;;  %v340_v9 = vadd.f32 %v339_v61, %v338_v54 }
  0x61   : > { %v312_v18 = vadd.f32 %v311_v17, %v310_v16  ;;  %v349_v10 = vadd.f32 %v348_v62, %v347_v55  ;;  %v379_v11 = vrot.slane %v378_v63, 2  ;;  %v393_v13 = vmul.f32 %v1713_v22, %v1710_v21 }
  0x62   : > { %v394_v14 = vmul.f32 %v1716_v23, %v1707_v20  ;;  %v404_v15 = vmul.f32 %v1697_v2, %v1707_v20  ;;  %v405_v16 = vmul.f32 %v1700_v3, %v1710_v21  ;;  %v362_v17 = vadd.f32 %v361_v0, %v360_v57 }
  0x63   : > { %v464_v19 = vmul.f32 0.125, %v312_v18  ;;  %v371_v18 = vadd.f32 %v370_v1, %v369_v58  ;;  %v321_v24 = vrot.slane %v320_v5, 1  ;;  %v330_v25 = vrot.slane %v329_v6, 1 }
  0x64   : > { %v386_v27 = vadd.f32 %v385_v8, %v384_v7  ;;  %v341_v28 = vrot.slane %v340_v9, 1  ;;  %v350_v29 = vrot.slane %v349_v10, 1  ;;  %v380_v30 = vadd.f32 %v379_v11, %v378_v63 }
  0x65   : > { %v1720_v26 = vadd.f32 0.0007071068, %v464_v19  ;;  %v395_v32 = vsub.f32 %v393_v13, %v394_v14  ;;  %v406_v33 = vadd.f32 %v405_v16, %v404_v15  ;;  %v413_v34 = vmul.f32 %v1697_v2, %v1710_v21 }
  0x66   : > { %v424_v36 = vmul.f32 %v1713_v22, %v1713_v22  ;;  %v425_v37 = vmul.f32 %v1716_v23, %v1716_v23  ;;  %v1755_v38 = vmul.f32 0.125, %v362_v17  ;;  %v1757_v39 = vmul.f32 0.125, %v371_v18 }
  0x67   : > { %v493_v35 = vmul.f32 %v1720_v26, %v1720_v26  ;;  %v322_v40 = vadd.f32 %v321_v24, %v320_v5  ;;  %v331_v41 = vadd.f32 %v330_v25, %v329_v6  ;;  %v342_v43 = vadd.f32 %v341_v28, %v340_v9 }
  0x68   : > { %v351_v44 = vadd.f32 %v350_v29, %v349_v10  ;;  %v396_v46 = vrot.slane %v395_v32, 4  ;;  %v434_v48 = vmul.f32 %v1697_v2, %v1713_v22  ;;  %v407_v51 = vrot.slane %v406_v33, 4 }
  0x69   : > { %v494_v42 = vadd.f32 5e-07, %v493_v35  ;;  %v414_v35 = vmul.f32 %v1700_v3, %v1707_v20  ;;  %v381_v20 = vrot.slane %v380_v30, 1  ;;  %v426_v52 = vadd.f32 %v425_v37, %v424_v36 }
  0x6a   : > { %v435_v55 = vmul.f32 %v1700_v3, %v1716_v23  ;;  %v1782_v62 = vmul.f32 0.125, %v322_v40  ;;  %v467_v63 = vmul.f32 0.125, %v331_v41  ;;  %v397_v5 = vadd.f32 %v396_v46, %v395_v32 }
  0x6b   : > { %1333 = vrcp.f32 %v494_v42  ;;  %v415_v47 = vsub.f32 %v413_v34, %v414_v35  ;;  %v1790_v8 = vadd.f32 %v407_v51, %v406_v33  ;;  %v427_v9 = vrot.slane %v426_v52, 4 }
  0x6c   : > { %v443_v10 = vmul.f32 %v1697_v2, %v1716_v23  ;;  %v436_v13 = vadd.f32 %v435_v55, %v434_v48  ;;  %v444_v14 = vmul.f32 %v1700_v3, %v1713_v22  ;;  %v1798_v15 = vsub.f32 0.0, %v467_v63 }
  0x6d   : > { %v416_v6 = vrot.slane %v415_v47, 4  ;;  %v398_v24 = vrot.slane %v397_v5, 2  ;;  %v454_v23 = vmul.f32 %v1697_v2, %v1697_v2  ;;  %v455_v25 = vmul.f32 %v1700_v3, %v1700_v3 }
  0x6e   : > { %v470_v28 = vmul.f32 0.125, %v351_v44  ;;  %v1823_v32 = vadd.f32 %v427_v9, %v426_v52  ;;  %v437_v33 = vrot.slane %v436_v13, 4  ;;  %v445_v37 = vsub.f32 %v443_v10, %v444_v14 }
  0x6f   : > { %v1821_v2 = vadd.f32 %v416_v6, %v415_v47  ;;  %v456_v40 = vadd.f32 %v455_v25, %v454_v23  ;;  %v1841_v48 = vadd.f32 %v398_v24, %v397_v5  ;;  %v474_v52 = vsub.f32 0.0, %v1757_v39 }
  0x71   : > { %v418_v51 = vrot.slane %v1821_v2, 2 }
  0x78   : > { %v1334_v4 = vpop.eup %1333 }
  0x79   : > { %v496_v12 = vmul.f32 %v1334_v4, %v494_v42  ;;  %v387_v42 = vrot.slane %v386_v27, 4 }
  0x7b   : > { %v497_v19 = vsub.f32 2.0, %v496_v12  ;;  %v388_v54 = vadd.f32 %v387_v42, %v386_v27  ;;  %v1812_v27 = vmul.f32 0.125, %v342_v43 }
  0x7d   : > { %v498_v31 = vmul.f32 %v1334_v4, %v497_v19  ;;  %v382_v4 = vadd.f32 %v381_v20, %v380_v30  ;;  %v389_v12 = vrot.slane %v388_v54, 2  ;;  %2310 = vst [vmem:[#allocation19_spill] sm:$0xff] %v1812_v27 }
  0x7f   : > { %v1760_v21 = vmul.f32 %v498_v31, %v1720_v26  ;;  %v500_v45 = vmul.f32 -0.0007071068, %v498_v31  ;;  %v409_v31 = vrot.slane %v1790_v8, 2  ;;  %v475_v41 = vmul.f32 0.125, %v382_v4 }
  0x80   : > { %v1839_v47 = vadd.f32 %v389_v12, %v388_v54  ;;  %v446_v54 = vrot.slane %v445_v37, 4 }
  0x81   : > { %v513_v53 = vmul.f32 %v1760_v21, %v1755_v38  ;;  %v514_v26 = vmul.f32 %v500_v45, %v1757_v39  ;;  %v516_v56 = vmul.f32 %v500_v45, %v1755_v38  ;;  %v517_v57 = vmul.f32 %v1760_v21, %v1757_v39 }
  0x82   : > { %v519_v59 = vmul.f32 %v1760_v21, %v1764_v49  ;;  %v520_v60 = vmul.f32 %v1766_v50, %v500_v45  ;;  %v522_v61 = vmul.f32 %v500_v45, %v1764_v49  ;;  %v523_v1 = vmul.f32 %v1766_v50, %v1760_v21 }
  0x83   : > { %v1776_v58 = vsub.f32 %v513_v53, %v514_v26  ;;  %v1784_v0 = vadd.f32 %v517_v57, %v516_v56  ;;  %v501_v16 = vmul.f32 %v1760_v21, %v1782_v62  ;;  %v502_v17 = vmul.f32 %v500_v45, %v467_v63 }
  0x84   : > { %v1788_v7 = vsub.f32 %v519_v59, %v520_v60  ;;  %v1794_v11 = vadd.f32 %v523_v1, %v522_v61  ;;  %v504_v18 = vmul.f32 %v500_v45, %v1782_v62  ;;  %v505_v19 = vmul.f32 %v1760_v21, %v467_v63 }
  0x85   : > { %2306 = vst [vmem:[#allocation15_spill] sm:$0xff] %v1776_v58  ;;  %2307 = vst [vmem:[#allocation16_spill] sm:$0xff] %v1784_v0  ;;  %v1827_v34 = vsub.f32 %v501_v16, %v502_v17  ;;  %v507_v43 = vmul.f32 %v1760_v21, %v1812_v27  ;;  %v508_v44 = vmul.f32 %v500_v45, %v470_v28  ;;  %v457_v56 = vrot.slane %v456_v40, 4 }
  0x86   : > { %2308 = vst [vmem:[#allocation17_spill] sm:$0xff] %v1788_v7  ;;  %2309 = vst [vmem:[#allocation18_spill] sm:$0xff] %v1794_v11  ;;  %v1810_v22 = vmul.f32 %v1788_v7, %v1782_v62  ;;  %v1816_v29 = vmul.f32 %v1794_v11, %v1798_v15  ;;  %v556_v30 = vmul.f32 %v1794_v11, %v1782_v62  ;;  %v1853_v57 = vsub.f32 0.0, %v470_v28 }
  0x87   : > { %v557_v3 = vmul.f32 %v1788_v7, %v1798_v15  ;;  %2311 = vst [vmem:[#allocation20_spill] sm:$0xff] %v1827_v34  ;;  %v1829_v35 = vadd.f32 %v505_v19, %v504_v18  ;;  %v510_v20 = vmul.f32 %v500_v45, %v1812_v27  ;;  %v511_v46 = vmul.f32 %v1760_v21, %v470_v28 }
  0x88   : > { %v525_v53 = vmul.f32 %v1827_v34, %v1782_v62  ;;  %v530_v21 = vmul.f32 %v1827_v34, %v1798_v15  ;;  %v438_v45 = vadd.f32 %v437_v33, %v436_v13  ;;  %v476_v59 = vadd.f32 0.0007071068, %v475_v41 }
  0x89   : > { %2312 = vst [vmem:[#allocation21_spill] sm:$0xff] %v1829_v35  ;;  %v1833_v42 = vadd.f32 %v557_v3, %v556_v30  ;;  %v526_v26 = vmul.f32 %v1829_v35, %v1798_v15  ;;  %v529_v55 = vmul.f32 %v1829_v35, %v1782_v62  ;;  %v1855_v60 = vsub.f32 %v507_v43, %v508_v44 }
  0x8a   : > { %v1857_v39 = vadd.f32 %v511_v46, %v510_v20  ;;  %v1861_v61 = vmul.f32 %v1788_v7, %v1812_v27  ;;  %v1865_v63 = vmul.f32 %v1794_v11, %v1853_v57  ;;  %v594_v1 = vmul.f32 %v1794_v11, %v1812_v27 }
  0x8b   : > { %2313 = vst [vmem:[#allocation22_spill] sm:$0xff] %v1855_v60  ;;  %v595_v4 = vmul.f32 %v1788_v7, %v1853_v57  ;;  %v1873_v5 = vmul.f32 %v1827_v34, %v1755_v38  ;;  %v527_v6 = vsub.f32 %v525_v53, %v526_v26  ;;  %v531_v9 = vadd.f32 %v530_v21, %v529_v55 }
  0x8c   : > { %2314 = vst [vmem:[#allocation23_spill] sm:$0xff] %v1857_v39  ;;  %v1876_v10 = vmul.f32 %v1829_v35, %v474_v52  ;;  %v605_v12 = vmul.f32 %v1829_v35, %v1755_v38  ;;  %v606_v16 = vmul.f32 %v1827_v34, %v474_v52  ;;  %v1887_v17 = vmul.f32 %v1855_v60, %v1755_v38 }
  0x8d   : > { %v1882_v14 = vadd.f32 %v595_v4, %v594_v1  ;;  %v447_v18 = vadd.f32 %v446_v54, %v445_v37  ;;  %v1892_v24 = vmul.f32 %v1857_v39, %v474_v52  ;;  %v613_v23 = vmul.f32 %v1857_v39, %v1755_v38 }
  0x8e   : > { %v410_v25 = vadd.f32 %v409_v31, %v1790_v8  ;;  %v429_v28 = vrot.slane %v1823_v32, 2  ;;  %v1898_v30 = vadd.f32 %v606_v16, %v605_v12  ;;  %v614_v3 = vmul.f32 %v1855_v60, %v474_v52 }
  0x8f   : > { %v1901_v33 = vsub.f32 %v476_v59, %v527_v6  ;;  %v1907_v41 = vmul.f32 %v1776_v58, %v1755_v38  ;;  %v1910_v43 = vmul.f32 %v1784_v0, %v474_v52  ;;  %v439_v44 = vrot.slane %v438_v45, 2 }
  0x90   : > { %v458_v8 = vadd.f32 %v457_v56, %v456_v40  ;;  %v1912_v31 = vsub.f32 0.0007071068, %v531_v9  ;;  %v1914_v20 = vadd.f32 %v614_v3, %v613_v23  ;;  %v448_v46 = vrot.slane %v447_v18, 2 }
  0x91   : > { %v621_v26 = vmul.f32 %v1784_v0, %v1755_v38  ;;  %v622_v55 = vmul.f32 %v1776_v58, %v474_v52  ;;  %v419_v21 = vadd.f32 %v418_v51, %v1821_v2  ;;  %v1924_v54 = vmul.f32 %v1788_v7, %v1755_v38 }
  0x92   : > { %v1927_v40 = vmul.f32 %v1794_v11, %v474_v52  ;;  %v632_v56 = vmul.f32 %v1794_v11, %v1755_v38  ;;  %v430_v59 = vadd.f32 %v429_v28, %v1823_v32  ;;  %v633_v4 = vmul.f32 %v1788_v7, %v474_v52 }
  0x93   : > { %v1932_v1 = vadd.f32 %v622_v55, %v621_v26  ;;  %v639_v6 = vmul.f32 %v1901_v33, %v1901_v33  ;;  %v440_v2 = vadd.f32 %v439_v44, %v438_v45  ;;  %v459_v51 = vrot.slane %v458_v8, 2 }
  0x94   : > { %2315 = vst [vmem:[#allocation24_spill] sm:$0xff] %v1927_v40  ;;  %v640_v12 = vmul.f32 %v1912_v31, %v1912_v31  ;;  %v449_v16 = vadd.f32 %v448_v46, %v447_v18  ;;  %v1941_v23 = vadd.f32 %v633_v4, %v632_v56  ;;  %v400_v38 = vrot.slane %v1841_v48, 1 }
  0x95   : > { %v391_v28 = vrot.slane %v1839_v47, 1  ;;  %v411_v52 = vrot.slane %v410_v25, 1  ;;  %v420_v3 = vrot.slane %v419_v21, 1  ;;  %v431_v26 = vrot.slane %v430_v59, 1 }
  0x96   : > { %2316 = vst [vmem:[#allocation25_spill] sm:$0xff] %v1941_v23  ;;  %v641_v32 = vadd.f32 %v640_v12, %v639_v6  ;;  %v441_v55 = vrot.slane %v440_v2, 1  ;;  %v460_v45 = vadd.f32 %v459_v51, %v458_v8  ;;  %v450_v44 = vrot.slane %v449_v16, 1 }
  0x97   : > { %v401_v9 = vadd.f32 %v400_v38, %v1841_v48  ;;  %v392_v53 = vadd.f32 %v391_v28, %v1839_v47  ;;  %v412_v37 = vadd.f32 %v411_v52, %v410_v25  ;;  %v421_v18 = vadd.f32 %v420_v3, %v419_v21 }
  0x98   : > { %1335 = vrcp.f32 %v641_v32  ;;  %v432_v46 = vadd.f32 %v431_v26, %v430_v59  ;;  %v442_v56 = vadd.f32 %v441_v55, %v440_v2  ;;  %v461_v4 = vrot.slane %v460_v45, 1 }
  0x99   : > { %v451_v19 = vadd.f32 %v450_v44, %v449_v16  ;;  %v478_v6 = vmul.f32 0.125, %v401_v9  ;;  %v477_v12 = vmul.f32 0.125, %v392_v53  ;;  %v480_v13 = vmul.f32 0.125, %v412_v37 }
  0x9a   : > { %v1947_v36 = vmul.f32 0.125, %v421_v18  ;;  %v462_v11 = vadd.f32 %v461_v4, %v460_v45  ;;  %v483_v8 = vmul.f32 0.125, %v432_v46  ;;  %v1949_v51 = vmul.f32 0.125, %v442_v56 }
  0x9b   : > { %v479_v7 = vsub.f32 0.0, %v478_v6  ;;  %v1952_v38 = vmul.f32 0.125, %v451_v19  ;;  %v533_v47 = vmul.f32 %v1855_v60, %v1782_v62  ;;  %v534_v25 = vmul.f32 %v1857_v39, %v1798_v15 }
  0x9c   : > { %v482_v48 = vsub.f32 0.0, %v1947_v36  ;;  %v537_v37 = vmul.f32 %v1857_v39, %v1782_v62  ;;  %v538_v53 = vmul.f32 %v1855_v60, %v1798_v15  ;;  %v541_v21 = vmul.f32 %v1776_v58, %v1782_v62 }
  0x9d   : > { %v542_v59 = vmul.f32 %v1784_v0, %v1798_v15  ;;  %v545_v19 = vmul.f32 %v1784_v0, %v1782_v62  ;;  %v546_v2 = vmul.f32 %v1776_v58, %v1798_v15  ;;  %v563_v9 = vmul.f32 %v1827_v34, %v1812_v27 }
  0x9e   : > { %v564_v16 = vmul.f32 %v1829_v35, %v1853_v57  ;;  %v484_v28 = vadd.f32 0.0007071068, %v483_v8  ;;  %v488_v52 = vmul.f32 0.125, %v462_v11  ;;  %v567_v3 = vmul.f32 %v1829_v35, %v1812_v27 }
  0x9f   : > { %v568_v26 = vmul.f32 %v1827_v34, %v1853_v57  ;;  %v571_v62 = vmul.f32 %v1855_v60, %v1812_v27  ;;  %v572_v15 = vmul.f32 %v1857_v39, %v1853_v57  ;;  %v575_v45 = vmul.f32 %v1857_v39, %v1812_v27 }
  0xa0   : > { %v576_v44 = vmul.f32 %v1855_v60, %v1853_v57  ;;  %v535_v11 = vsub.f32 %v533_v47, %v534_v25  ;;  %v539_v18 = vadd.f32 %v538_v53, %v537_v37  ;;  %v543_v46 = vsub.f32 %v541_v21, %v542_v59 }
  0xa1   : > { %v487_v4 = vsub.f32 0.0, %v1952_v38  ;;  %v547_v8 = vadd.f32 %v546_v2, %v545_v19  ;;  %v2317_v35 = vsub.f32 %v1810_v22, %v1816_v29  ;;  %v565_v0 = vsub.f32 %v563_v9, %v564_v16 }
  0xa2   : > { %v560_v58 = vrot.slane %v1833_v42, 7  ;;  %v569_v23 = vadd.f32 %v568_v26, %v567_v3  ;;  %v647_v39 = vsub.f32 0.0, %v1912_v31  ;;  %v489_v27 = vadd.f32 0.0007071068, %v488_v52 }
  0xa3   : > { %v553_v34 = vrot.slane %v2317_v35, 7  ;;  %v573_v60 = vsub.f32 %v571_v62, %v572_v15  ;;  %v577_v47 = vadd.f32 %v576_v44, %v575_v45  ;;  %v536_v37 = vsub.f32 %v477_v12, %v535_v11 }
  0xa4   : > { %v540_v53 = vsub.f32 %v478_v6, %v539_v18  ;;  %v544_v21 = vsub.f32 %v480_v13, %v543_v46  ;;  %v548_v29 = vsub.f32 %v1947_v36, %v547_v8  ;;  %v1999_v42 = vsub.f32 %v477_v12, %v565_v0  ;;  %v2322_v46 = vld [vmem:[#allocation24_spill] sm:$0xff] }
  0xa5   : > { %v1336_v55 = vpop.eup %1335  ;;  %v555_v35 = vsub.f32 %v1764_v49, %v553_v34  ;;  %v598_v31 = vrot.slane %v1882_v14, 6  ;;  %v562_v59 = vsub.f32 %v1766_v50, %v560_v58  ;;  %v2003_v19 = vsub.f32 %v479_v7, %v569_v23 }
  0xa6   : > { %v643_v56 = vmul.f32 %v1336_v55, %v641_v32  ;;  %v2318_v32 = vsub.f32 %v1861_v61, %v1865_v63  ;;  %v574_v2 = vsub.f32 %v484_v28, %v573_v60  ;;  %v578_v9 = vsub.f32 0.0007071068, %v577_v47 }
  0xa7   : > { %v2319_v36 = vsub.f32 %v1873_v5, %v1876_v10  ;;  %v600_v58 = vsub.f32 %v1766_v50, %v598_v31  ;;  %v608_v7 = vsub.f32 %v482_v48, %v1898_v30  ;;  %v2321_v15 = vsub.f32 %v1907_v41, %v1910_v43 }
  0xa8   : > { %v644_v40 = vsub.f32 2.0, %v643_v56  ;;  %v1995_v25 = vrot.slane %v2318_v32, 6  ;;  %v624_v44 = vsub.f32 0.0007071068, %v1932_v1  ;;  %v2323_v56 = vsub.f32 %v1924_v54, %v2322_v46  ;;  %v2325_v46 = vld [vmem:[#allocation19_spill] sm:$0xff] }
  0xa9   : > { %v604_v34 = vsub.f32 %v480_v13, %v2319_v36  ;;  %v620_v45 = vsub.f32 %v489_v27, %v2321_v15 }
  0xaa   : > { %v645_v22 = vmul.f32 %v1336_v55, %v644_v40  ;;  %v593_v40 = vsub.f32 %v1764_v49, %v1995_v25  ;;  %v2324_v25 = vld [vmem:[#allocation25_spill] sm:$0xff] }
  0xab   : > { %v636_v41 = vrot.slane %v2324_v25, 5 }
  0xac   : > { %v646_v61 = vmul.f32 %v645_v22, %v1901_v33  ;;  %v648_v63 = vmul.f32 %v647_v39, %v645_v22  ;;  %v2320_v39 = vsub.f32 %v1887_v17, %v1892_v24  ;;  %v616_v33 = vsub.f32 %v487_v4, %v1914_v20 }
  0xad   : > { %v629_v4 = vrot.slane %v2323_v56, 5  ;;  %v2326_v56 = vld [vmem:[#allocation15_spill] sm:$0xff] }
  0xae   : > { %v649_v0 = vmul.f32 %v646_v61, %v536_v37  ;;  %v650_v6 = vmul.f32 %v648_v63, %v540_v53  ;;  %v652_v12 = vmul.f32 %v648_v63, %v536_v37  ;;  %v653_v14 = vmul.f32 %v646_v61, %v540_v53 }
  0xaf   : > { %v612_v60 = vsub.f32 %v1949_v51, %v2320_v39  ;;  %v661_v5 = vmul.f32 %v646_v61, %v555_v35  ;;  %v662_v10 = vmul.f32 %v648_v63, %v562_v59  ;;  %v655_v13 = vmul.f32 %v646_v61, %v544_v21 }
  0xb0   : > { %v2018_v23 = vsub.f32 %v649_v0, %v650_v6  ;;  %v2020_v16 = vadd.f32 %v653_v14, %v652_v12  ;;  %v656_v28 = vmul.f32 %v648_v63, %v548_v29  ;;  %v664_v52 = vmul.f32 %v648_v63, %v555_v35 }
  0xb1   : > { %v665_v3 = vmul.f32 %v646_v61, %v562_v59  ;;  %v2022_v26 = vsub.f32 %v661_v5, %v662_v10  ;;  %v658_v20 = vmul.f32 %v648_v63, %v544_v21  ;;  %v659_v48 = vmul.f32 %v646_v61, %v548_v29 }
  0xb2   : > { %v667_v30 = vmul.f32 %v2018_v23, %v1999_v42  ;;  %v668_v17 = vmul.f32 %v2020_v16, %v2003_v19  ;;  %v671_v24 = vmul.f32 %v2020_v16, %v1999_v42  ;;  %v672_v62 = vmul.f32 %v2018_v23, %v2003_v19 }
  0xb3   : > { %v2030_v55 = vadd.f32 %v665_v3, %v664_v52  ;;  %v683_v18 = vmul.f32 %v2022_v26, %v1999_v42  ;;  %v2048_v27 = vsub.f32 %v655_v13, %v656_v28  ;;  %v691_v43 = vmul.f32 %v2022_v26, %v2003_v19 }
  0xb4   : > { %v669_v11 = vsub.f32 %v667_v30, %v668_v17  ;;  %v673_v8 = vadd.f32 %v672_v62, %v671_v24  ;;  %v697_v1 = vmul.f32 %v2018_v23, %v604_v34  ;;  %v2053_v37 = vadd.f32 %v659_v48, %v658_v20 }
  0xb5   : > { %v684_v47 = vmul.f32 %v2030_v55, %v2003_v19  ;;  %v690_v32 = vmul.f32 %v2030_v55, %v1999_v42  ;;  %v698_v21 = vmul.f32 %v2020_v16, %v608_v7  ;;  %v701_v35 = vmul.f32 %v2020_v16, %v604_v34 }
  0xb6   : > { %v670_v54 = vsub.f32 %v574_v2, %v669_v11  ;;  %v674_v22 = vsub.f32 %v578_v9, %v673_v8  ;;  %v702_v31 = vmul.f32 %v2018_v23, %v608_v7  ;;  %v705_v63 = vmul.f32 %v2048_v27, %v604_v34 }
  0xb7   : > { %v685_v53 = vsub.f32 %v683_v18, %v684_v47  ;;  %v692_v29 = vadd.f32 %v691_v43, %v690_v32  ;;  %v699_v61 = vsub.f32 %v697_v1, %v698_v21  ;;  %v706_v36 = vmul.f32 %v2053_v37, %v608_v7 }
  0xb8   : > { %v703_v6 = vadd.f32 %v702_v31, %v701_v35  ;;  %v709_v12 = vmul.f32 %v2053_v37, %v604_v34  ;;  %v710_v2 = vmul.f32 %v2048_v27, %v608_v7  ;;  %v713_v5 = vmul.f32 %v2022_v26, %v604_v34 }
  0xb9   : > { %v687_v59 = vrot.slane %v685_v53, 7  ;;  %v694_v0 = vrot.slane %v692_v29, 7  ;;  %v2062_v39 = vsub.f32 %v612_v60, %v699_v61  ;;  %v707_v9 = vsub.f32 %v705_v63, %v706_v36 }
  0xba   : > { %v704_v13 = vsub.f32 %v616_v33, %v703_v6  ;;  %v711_v28 = vadd.f32 %v710_v2, %v709_v12  ;;  %v714_v52 = vmul.f32 %v2030_v55, %v608_v7  ;;  %v720_v30 = vmul.f32 %v2030_v55, %v604_v34 }
  0xbb   : > { %v689_v14 = vsub.f32 %v593_v40, %v687_v59  ;;  %v696_v10 = vsub.f32 %v600_v58, %v694_v0  ;;  %v2066_v3 = vsub.f32 %v620_v45, %v707_v9  ;;  %v721_v17 = vmul.f32 %v2022_v26, %v608_v7  ;;  %v2327_v7 = vld [vmem:[#allocation16_spill] sm:$0xff] }
  0xbc   : > { %v727_v24 = vmul.f32 %v670_v54, %v670_v54  ;;  %v631_v20 = vsub.f32 %v1764_v49, %v629_v4  ;;  %v712_v40 = vsub.f32 %v624_v44, %v711_v28  ;;  %v715_v60 = vsub.f32 %v713_v5, %v714_v52 }
  0xbd   : > { %v728_v48 = vmul.f32 %v674_v22, %v674_v22  ;;  %v638_v62 = vsub.f32 %v1766_v50, %v636_v41  ;;  %v722_v15 = vadd.f32 %v721_v17, %v720_v30  ;;  %v579_v34 = vmul.f32 %v2326_v56, %v2325_v46 }
  0xbe   : > { %v717_v58 = vrot.slane %v715_v60, 6  ;;  %v580_v8 = vmul.f32 %v2327_v7, %v1853_v57  ;;  %v583_v44 = vmul.f32 %v2327_v7, %v2325_v46  ;;  %v584_v4 = vmul.f32 %v2326_v56, %v1853_v57 }
  0xbf   : > { %v729_v33 = vadd.f32 %v728_v48, %v727_v24  ;;  %v724_v11 = vrot.slane %v722_v15, 6  ;;  %v675_v25 = vmul.f32 %v2048_v27, %v1999_v42  ;;  %v676_v41 = vmul.f32 %v2053_v37, %v2003_v19 }
  0xc0   : > { %v719_v18 = vsub.f32 %v631_v20, %v717_v58  ;;  %v581_v47 = vsub.f32 %v579_v34, %v580_v8  ;;  %v585_v32 = vadd.f32 %v584_v4, %v583_v44  ;;  %v679_v43 = vmul.f32 %v2053_v37, %v1999_v42 }
  0xc1   : > { %1337 = vrcp.f32 %v729_v33  ;;  %v726_v45 = vsub.f32 %v638_v62, %v724_v11  ;;  %v680_v1 = vmul.f32 %v2048_v27, %v2003_v19  ;;  %v677_v57 = vsub.f32 %v675_v25, %v676_v41 }
  0xc2   : > { %v582_v21 = vsub.f32 %v1949_v51, %v581_v47  ;;  %v586_v29 = vsub.f32 %v1952_v38, %v585_v32  ;;  %v735_v61 = vsub.f32 0.0, %v674_v22 }
  0xc3   : > { %v681_v35 = vadd.f32 %v680_v1, %v679_v43 }
  0xc4   : > { %v678_v63 = vsub.f32 %v582_v21, %v677_v57 }
  0xc5   : > { %v682_v36 = vsub.f32 %v586_v29, %v681_v35 }
  0xce   : > { %v1338_v53 = vpop.eup %1337 }
  0xcf   : > { %v731_v31 = vmul.f32 %v1338_v53, %v729_v33 }
  0xd1   : > { %v732_v59 = vsub.f32 2.0, %v731_v31 }
  0xd3   : > { %v733_v0 = vmul.f32 %v1338_v53, %v732_v59 }
  0xd5   : > { %v734_v6 = vmul.f32 %v733_v0, %v670_v54  ;;  %v736_v12 = vmul.f32 %v735_v61, %v733_v0 }
  0xd7   : > { %v737_v2 = vmul.f32 %v734_v6, %v678_v63  ;;  %v738_v42 = vmul.f32 %v736_v12, %v682_v36  ;;  %v740_v9 = vmul.f32 %v736_v12, %v678_v63  ;;  %v741_v5 = vmul.f32 %v734_v6, %v682_v36 }
  0xd8   : > { %v743_v19 = vmul.f32 %v734_v6, %v689_v14  ;;  %v744_v28 = vmul.f32 %v736_v12, %v696_v10  ;;  %v746_v52 = vmul.f32 %v736_v12, %v689_v14  ;;  %v747_v51 = vmul.f32 %v734_v6, %v696_v10 }
  0xd9   : > { %v739_v30 = vsub.f32 %v737_v2, %v738_v42  ;;  %v742_v38 = vadd.f32 %v741_v5, %v740_v9 }
  0xda   : > { %v745_v17 = vsub.f32 %v743_v19, %v744_v28  ;;  %v748_v24 = vadd.f32 %v747_v51, %v746_v52 }
  0xdb   : > { %v749_v20 = vmul.f32 %v739_v30, %v2062_v39  ;;  %v750_v22 = vmul.f32 %v742_v38, %v704_v13  ;;  %v753_v60 = vmul.f32 %v742_v38, %v2062_v39  ;;  %v754_v48 = vmul.f32 %v739_v30, %v704_v13 }
  0xdc   : > { %v757_v54 = vmul.f32 %v745_v17, %v2062_v39  ;;  %v758_v62 = vmul.f32 %v748_v24, %v704_v13  ;;  %v764_v15 = vmul.f32 %v748_v24, %v2062_v39  ;;  %v765_v58 = vmul.f32 %v745_v17, %v704_v13 }
  0xdd   : > { %v751_v33 = vsub.f32 %v749_v20, %v750_v22  ;;  %v755_v11 = vadd.f32 %v754_v48, %v753_v60 }
  0xde   : > { %v759_v14 = vsub.f32 %v757_v54, %v758_v62  ;;  %v766_v10 = vadd.f32 %v765_v58, %v764_v15  ;;  %v2328_v15 = vld [vmem:[#allocation22_spill] sm:$0xff]  ;;  %v2329_v58 = vld [vmem:[#allocation23_spill] sm:$0xff] }
  0xdf   : > { %v752_v46 = vsub.f32 %v2066_v3, %v751_v33  ;;  %v756_v34 = vsub.f32 %v712_v40, %v755_v11 }
  0xe0   : > { %v761_v8 = vrot.slane %v759_v14, 7  ;;  %v768_v44 = vrot.slane %v766_v10, 7 }
  0xe1   : > { %v771_v4 = vmul.f32 %v752_v46, %v752_v46  ;;  %v772_v47 = vmul.f32 %v756_v34, %v756_v34  ;;  %v779_v39 = vsub.f32 0.0, %v756_v34 }
  0xe2   : > { %v763_v32 = vsub.f32 %v719_v18, %v761_v8  ;;  %v770_v25 = vsub.f32 %v726_v45, %v768_v44  ;;  %v2331_v8 = vld [vmem:[#allocation18_spill] sm:$0xff] }
  0xe3   : > { %v773_v41 = vadd.f32 %v772_v47, %v771_v4 }
  0xe5   : > { %1339 = vrcp.f32 %v773_v41 }
  0xf2   : > { %v1340_v43 = vpop.eup %1339 }
  0xf3   : > { %v775_v1 = vmul.f32 %v1340_v43, %v773_v41 }
  0xf5   : > { %v776_v53 = vsub.f32 2.0, %v775_v1 }
  0xf7   : > { %v777_v13 = vmul.f32 %v1340_v43, %v776_v53 }
  0xf9   : > { %v778_v21 = vmul.f32 %v777_v13, %v752_v46  ;;  %v780_v29 = vmul.f32 %v779_v39, %v777_v13  ;;  %v2330_v46 = vld [vmem:[#allocation17_spill] sm:$0xff] }
  0xfb   : > { %v781_v57 = vmul.f32 %v778_v21, %v763_v32  ;;  %v782_v35 = vmul.f32 %v780_v29, %v770_v25  ;;  %v784_v31 = vmul.f32 %v780_v29, %v763_v32  ;;  %v785_v3 = vmul.f32 %v778_v21, %v770_v25 }
  0xfd   : > { %v2095_v40 = vsub.f32 %v781_v57, %v782_v35  ;;  %v2097_v59 = vadd.f32 %v785_v3, %v784_v31  ;;  %v2332_v57 = vld [vmem:[#allocation20_spill] sm:$0xff] }
  0xff   : > { %v787_v18 = vmul.f32 %v2095_v40, %v2326_v56  ;;  %v788_v45 = vmul.f32 %v2097_v59, %v2327_v7  ;;  %v794_v61 = vmul.f32 %v2097_v59, %v2326_v56  ;;  %v795_v63 = vmul.f32 %v2095_v40, %v2327_v7 }
 0x100   : > { %v801_v36 = vmul.f32 %v2095_v40, %v2048_v27  ;;  %v802_v0 = vmul.f32 %v2097_v59, %v2053_v37  ;;  %v808_v6 = vmul.f32 %v2097_v59, %v2048_v27  ;;  %v809_v12 = vmul.f32 %v2095_v40, %v2053_v37 }
 0x101   : > { %v815_v2 = vmul.f32 %v2095_v40, %v739_v30  ;;  %v816_v42 = vmul.f32 %v2097_v59, %v742_v38  ;;  %v789_v56 = vsub.f32 %v787_v18, %v788_v45  ;;  %v822_v9 = vmul.f32 %v2097_v59, %v739_v30 }
 0x102   : > { %v823_v7 = vmul.f32 %v2095_v40, %v742_v38  ;;  %v796_v5 = vadd.f32 %v795_v63, %v794_v61  ;;  %v803_v19 = vsub.f32 %v801_v36, %v802_v0  ;;  %v810_v28 = vadd.f32 %v809_v12, %v808_v6 }
 0x103   : > { %v817_v52 = vsub.f32 %v815_v2, %v816_v42  ;;  %v791_v22 = vrot.slane %v789_v56, 3 }
 0x104   : > { %v824_v51 = vadd.f32 %v823_v7, %v822_v9  ;;  %v798_v60 = vrot.slane %v796_v5, 3  ;;  %v805_v48 = vrot.slane %v803_v19, 2  ;;  %v812_v37 = vrot.slane %v810_v28, 2 }
 0x105   : > { %v819_v20 = vrot.slane %v817_v52, 1  ;;  %v793_v34 = vsub.f32 %v2330_v46, %v791_v22 }
 0x106   : > { %v826_v27 = vrot.slane %v824_v51, 1  ;;  %v800_v44 = vsub.f32 %v2331_v8, %v798_v60  ;;  %v807_v4 = vsub.f32 %v2022_v26, %v805_v48  ;;  %v814_v47 = vsub.f32 %v2030_v55, %v812_v37  ;;  %v2333_v26 = vld [vmem:[#allocation21_spill] sm:$0xff] }
 0x107   : > { %v2119_v54 = vsub.f32 %v745_v17, %v819_v20 }
 0x108   : > { %v2121_v62 = vsub.f32 %v748_v24, %v826_v27 }
 0x109   : > { %v829_v30 = vmul.f32 %v2119_v54, %v2328_v15  ;;  %v837_v38 = vmul.f32 %v2119_v54, %v2329_v58  ;;  %v843_v33 = vmul.f32 %v2119_v54, %v2018_v23  ;;  %v851_v11 = vmul.f32 %v2119_v54, %v2020_v16 }
 0x10a   : > { %v830_v14 = vmul.f32 %v2121_v62, %v2329_v58  ;;  %v836_v17 = vmul.f32 %v2121_v62, %v2328_v15  ;;  %v844_v24 = vmul.f32 %v2121_v62, %v2020_v16  ;;  %v850_v10 = vmul.f32 %v2121_v62, %v2018_v23 }
 0x10b   : > { %v897_v7 = vmul.f32 %v2119_v54, %v1764_v49  ;;  %v907_v5 = vmul.f32 %v2121_v62, %v1764_v49  ;;  %v902_v20 = vmul.f32 %v1766_v50, %v2121_v62  ;;  %v912_v22 = vmul.f32 %v1766_v50, %v2119_v54 }
 0x10c   : > { %v831_v32 = vsub.f32 %v829_v30, %v830_v14  ;;  %v838_v25 = vadd.f32 %v837_v38, %v836_v17  ;;  %v845_v41 = vsub.f32 %v843_v33, %v844_v24  ;;  %v852_v43 = vadd.f32 %v851_v11, %v850_v10 }
 0x10d   : > { %v917_v15 = vmul.f32 %v2095_v40, %v1764_v49  ;;  %v927_v30 = vmul.f32 %v2097_v59, %v1764_v49  ;;  %v899_v33 = vrot.slane %v897_v7, 2  ;;  %v909_v11 = vrot.slane %v907_v5, 2 }
 0x10e   : > { %v833_v1 = vrot.slane %v831_v32, 2  ;;  %v840_v53 = vrot.slane %v838_v25, 2  ;;  %v847_v39 = vrot.slane %v845_v41, 1  ;;  %v854_v13 = vrot.slane %v852_v43, 1 }
 0x10f   : > { %v922_v14 = vmul.f32 %v1766_v50, %v2097_v59  ;;  %v932_v17 = vmul.f32 %v1766_v50, %v2095_v40  ;;  %v904_v46 = vrot.slane %v902_v20, 2 }
 0x110   : > { %v835_v16 = vsub.f32 %v793_v34, %v833_v1  ;;  %v842_v21 = vsub.f32 %v800_v44, %v840_v53  ;;  %v2143_v29 = vsub.f32 %v807_v4, %v847_v39  ;;  %v2145_v23 = vsub.f32 %v814_v47, %v854_v13 }
 0x111   : > { %v914_v34 = vrot.slane %v912_v22, 2  ;;  %v919_v4 = vrot.slane %v917_v15, 3  ;;  %v929_v47 = vrot.slane %v927_v30, 3  ;;  %v924_v25 = vrot.slane %v922_v14, 3 }
 0x112   : > { %v857_v35 = vmul.f32 %v2143_v29, %v2332_v57  ;;  %v858_v55 = vmul.f32 %v2145_v23, %v2333_v26  ;;  %v864_v31 = vmul.f32 %v2145_v23, %v2332_v57  ;;  %v865_v3 = vmul.f32 %v2143_v29, %v2333_v26 }
 0x113   : > { %v877_v61 = vmul.f32 %v2143_v29, %v1764_v49  ;;  %v887_v63 = vmul.f32 %v2145_v23, %v1764_v49  ;;  %v882_v2 = vmul.f32 %v1766_v50, %v2145_v23  ;;  %v892_v42 = vmul.f32 %v1766_v50, %v2143_v29 }
 0x114   : > { %v859_v18 = vsub.f32 %v857_v35, %v858_v55  ;;  %v866_v45 = vadd.f32 %v865_v3, %v864_v31  ;;  %v934_v41 = vrot.slane %v932_v17, 3  ;;  %v985_v57 = vlaneseq }
 0x115   : > { %v879_v56 = vrot.slane %v877_v61, 1  ;;  %v889_v9 = vrot.slane %v887_v63, 1  ;;  %v884_v48 = vrot.slane %v882_v2, 1  ;;  %v894_v37 = vrot.slane %v892_v42, 1 }
 0x116   : > { %v861_v36 = vrot.slane %v859_v18, 1  ;;  %v868_v0 = vrot.slane %v866_v45, 1  ;;  %v986_v31 = vshrl.u32 %v985_v57, 7 }
 0x118   : > { %v2159_v6 = vsub.f32 %v835_v16, %v861_v36  ;;  %v2161_v12 = vsub.f32 %v842_v21, %v868_v0  ;;  %v987_v61 = vsub.s32 0, %v986_v31  ;;  %v991_v63 = vsub.s32 1, %v986_v31 }
 0x119   : > { %v995_v36 = vsub.s32 2, %v986_v31  ;;  %v999_v0 = vsub.s32 3, %v986_v31 }
 0x11a   : > { %v871_v19 = vmul.f32 %v2159_v6, %v1764_v49  ;;  %v872_v28 = vmul.f32 %v1766_v50, %v2161_v12  ;;  %v874_v52 = vmul.f32 %v2161_v12, %v1764_v49  ;;  %v875_v51 = vmul.f32 %v1766_v50, %v2159_v6 }
 0x11c   : > { %v873_v27 = vadd.f32 %v872_v28, %v871_v19  ;;  %v876_v60 = vsub.f32 %v874_v52, %v875_v51 }
 0x11e   : > { %v881_v58 = vadd.f32 %v879_v56, %v873_v27  ;;  %v891_v38 = vadd.f32 %v889_v9, %v876_v60 }
 0x120   : > { %v886_v24 = vadd.f32 %v884_v48, %v881_v58  ;;  %v896_v10 = vsub.f32 %v891_v38, %v894_v37 }
 0x122   : > { %v901_v8 = vadd.f32 %v899_v33, %v886_v24  ;;  %v911_v44 = vadd.f32 %v909_v11, %v896_v10 }
 0x124   : > { %v906_v32 = vadd.f32 %v904_v46, %v901_v8  ;;  %v916_v49 = vsub.f32 %v911_v44, %v914_v34  ;;  %v1017_v46 = vld [vmem:[%s1688_s7] sm:$0xff]  ;;  %v1239_v34 = vld [vmem:[%s1688_s7 + $0x8] sm:$0xff] }
 0x126   : > { %v921_v43 = vadd.f32 %v919_v4, %v906_v32  ;;  %v931_v1 = vadd.f32 %v929_v47, %v916_v49  ;;  %v1240_v47 = vld [vmem:[%s1688_s7 + $0x28] sm:$0xff] }
 0x128   : > { %v926_v53 = vadd.f32 %v924_v25, %v921_v43  ;;  %v936_v39 = vsub.f32 %v931_v1, %v934_v41  ;;  %v1241_v25 = vld [vmem:[%s1688_s7 + $0x10] sm:$0xff] }
 0x129   : > { %v1242_v41 = vld [vmem:[%s1688_s7 + $0x30] sm:$0xff] }
 0x12a   : > { %v937_v13 = vmul.f32 %v926_v53, %v926_v53  ;;  %v938_v16 = vmul.f32 %v936_v39, %v936_v39  ;;  %v945_v55 = vsub.f32 0.0, %v936_v39 }
 0x12c   : > { %v939_v21 = vadd.f32 %v938_v16, %v937_v13 }
 0x12e   : > { %1341 = vrcp.f32 %v939_v21 }
 0x13b   : > { %v1342_v50 = vpop.eup %1341 }
 0x13c   : > { %v941_v35 = vmul.f32 %v1342_v50, %v939_v21  ;;  %v1243_v21 = vld [vmem:[%s1688_s7 + $0x18] sm:$0xff] }
 0x13e   : > { %v942_v26 = vsub.f32 2.0, %v941_v35 }
 0x140   : > { %v943_v3 = vmul.f32 %v1342_v50, %v942_v26 }
 0x142   : > { %v944_v18 = vmul.f32 %v943_v3, %v926_v53  ;;  %v946_v45 = vmul.f32 %v945_v55, %v943_v3  ;;  %v1244_v55 = vld [vmem:[%s1688_s7 + $0x38] sm:$0xff] }
 0x144   : > { %v947_v2 = vmul.f32 %v944_v18, %v2159_v6  ;;  %v948_v42 = vmul.f32 %v946_v45, %v2161_v12  ;;  %v951_v56 = vrot.slane %v944_v18, 7  ;;  %v955_v9 = vrot.slane %v946_v45, 7 }
 0x145   : > { %v959_v7 = vrot.slane %v944_v18, 6  ;;  %v962_v5 = vrot.slane %v946_v45, 6  ;;  %v966_v19 = vrot.slane %v944_v18, 5  ;;  %v969_v28 = vrot.slane %v946_v45, 5 }
 0x146   : > { %v949_v52 = vsub.f32 %v947_v2, %v948_v42  ;;  %v953_v51 = vmul.f32 %v951_v56, %v2143_v29  ;;  %v957_v20 = vmul.f32 %v955_v9, %v2145_v23  ;;  %v973_v22 = vmul.f32 %v946_v45, %v2159_v6 }
 0x147   : > { %v961_v27 = vmul.f32 %v959_v7, %v2119_v54  ;;  %v964_v60 = vmul.f32 %v962_v5, %v2121_v62  ;;  %v968_v48 = vmul.f32 %v966_v19, %v2095_v40  ;;  %v971_v37 = vmul.f32 %v969_v28, %v2097_v59 }
 0x148   : > { %v958_v15 = vsub.f32 %v953_v51, %v957_v20  ;;  %v974_v30 = vmul.f32 %v944_v18, %v2161_v12  ;;  %v976_v58 = vmul.f32 %v955_v9, %v2143_v29  ;;  %v977_v38 = vmul.f32 %v951_v56, %v2145_v23  ;;  %v1238_v29 = vld [vmem:[%s1688_s7 + $0x20] sm:$0xff] }
 0x149   : > { %v965_v6 = vsub.f32 %v961_v27, %v964_v60  ;;  %v972_v33 = vsub.f32 %v968_v48, %v971_v37  ;;  %v979_v11 = vmul.f32 %v962_v5, %v2119_v54  ;;  %v980_v14 = vmul.f32 %v959_v7, %v2121_v62 }
 0x14a   : > { %v975_v17 = vadd.f32 %v974_v30, %v973_v22  ;;  %v978_v24 = vadd.f32 %v977_v38, %v976_v58  ;;  %v982_v10 = vmul.f32 %v969_v28, %v2095_v40  ;;  %v983_v12 = vmul.f32 %v966_v19, %v2097_v59 }
 0x14b   : > { %v981_v23 = vadd.f32 %v980_v14, %v979_v11  ;;  %v988_v8 = vrot.slane %v949_v52, %v987_v61  ;;  %v992_v44 = vrot.slane %v958_v15, %v991_v63  ;;  %v996_v4 = vrot.slane %v965_v6, %v995_v36 }
 0x14c   : > { %v984_v54 = vadd.f32 %v983_v12, %v982_v10  ;;  %v1000_v62 = vrot.slane %v972_v33, %v999_v0  ;;  %v1004_v32 = vrot.slane %v975_v17, %v987_v61  ;;  %v1008_v49 = vrot.slane %v978_v24, %v991_v63 }
 0x14d   : > { %v1012_v40 = vrot.slane %v981_v23, %v995_v36  ;;  %v1020_v43 = vmul.f32 %v1017_v46, %v988_v8  ;;  %v1023_v59 = vmul.f32 %v1238_v29, %v988_v8  ;;  %v1030_v1 = vmul.f32 %v1239_v34, %v992_v44 }
 0x14e   : > { %v1016_v53 = vrot.slane %v984_v54, %v999_v0  ;;  %v1021_v39 = vmul.f32 %v1238_v29, %v1004_v32  ;;  %v1024_v13 = vmul.f32 %v1017_v46, %v1004_v32  ;;  %v1031_v16 = vmul.f32 %v1240_v47, %v1008_v49 }
 0x14f   : > { %v1033_v50 = vmul.f32 %v1240_v47, %v992_v44  ;;  %v1034_v57 = vmul.f32 %v1239_v34, %v1008_v49  ;;  %v1042_v35 = vmul.f32 %v1241_v25, %v996_v4  ;;  %v1043_v26 = vmul.f32 %v1242_v41, %v1012_v40 }
 0x150   : > { %v1022_v31 = vadd.f32 %v1021_v39, %v1020_v43  ;;  %v1025_v3 = vsub.f32 %v1023_v59, %v1024_v13  ;;  %v1032_v18 = vadd.f32 %v1031_v16, %v1030_v1  ;;  %v1045_v45 = vmul.f32 %v1242_v41, %v996_v4 }
 0x151   : > { %v1035_v61 = vsub.f32 %v1033_v50, %v1034_v57  ;;  %v1044_v63 = vadd.f32 %v1043_v26, %v1042_v35  ;;  %v1046_v36 = vmul.f32 %v1241_v25, %v1012_v40  ;;  %v1054_v2 = vmul.f32 %v1243_v21, %v1000_v62 }
 0x152   : > { %v1036_v0 = vadd.f32 %v1032_v18, %v1022_v31  ;;  %v1055_v42 = vmul.f32 %v1244_v55, %v1016_v53  ;;  %v1057_v56 = vmul.f32 %v1244_v55, %v1000_v62  ;;  %v1058_v9 = vmul.f32 %v1243_v21, %v1016_v53 }
 0x153   : > { %v1037_v7 = vadd.f32 %v1035_v61, %v1025_v3  ;;  %v1047_v5 = vsub.f32 %v1045_v45, %v1046_v36 }
 0x154   : > { %v1048_v19 = vadd.f32 %v1044_v63, %v1036_v0  ;;  %v1056_v28 = vadd.f32 %v1055_v42, %v1054_v2  ;;  %v1059_v52 = vsub.f32 %v1057_v56, %v1058_v9 }
 0x155   : > { %v1049_v51 = vadd.f32 %v1047_v5, %v1037_v7 }
 0x156   : > { %v1060_v20 = vadd.f32 %v1056_v28, %v1048_v19 }
 0x157   : > { %v1061_v22 = vadd.f32 %v1059_v52, %v1049_v51 }
 0x158   : > { %1062 = vst [vmem:[%s288_s30] sm:$0xff] %v1060_v20 }
 0x159   : > { %1245 = vst [vmem:[%s288_s30 + $0x8] sm:$0xff] %v1061_v22 }
 0x15a   : > { %1440 = shalt.err (!%p1437_p12)
}
 0x15b   : > { %s1441_s20 = scalar_lea.hbm %s2222_s8, 256  ;;  %s1445_s23 = scalar_lea.hbm %s2275_s3, 512 }
 0x15c   : > { %p1442_p5 = scmp.ne.s32.totalorder %s2222_s8, %s1441_s20  ;;  %p1446_p6 = scmp.lt.s32.totalorder %s2222_s8, %s2275_s3 }
 0x15d   : > { %p1447_p7 = scmp.lt.s32.totalorder %s1445_s23, %s1441_s20 }
 0x15e   : > { %p1443_p1 = pnand %p1442_p5, %p1598_p9 }
 0x15f   : > { %p1448_p8 = por %p1447_p7, %p1446_p6 }
 0x160   : > { %p1444_p2 = pneg %p1443_p1 }
 0x162   : > { %p1449_p0 = pnand %p1448_p8, %p1444_p2 }
 0x164   : > { %1452 = shalt.err (!%p1449_p0)
}
 0x165   : > { %s1521_s7 = smov 128   ;;  %s1522_s18 = smov 8  }
 0x166   : > { %1261 = dma.vmem_to_hbm [thread:$0]  (%p1598_p9), %s2224_s9, 256, %s2222_s8, %s1066_s15, %s1521_s7, %s1521_s7, %s1522_s18  }
 0x167 PF: > { %s1095_s24 = sand.u32 1, %s1491_s12   ;;  %p2334_p3 = scmp.ge.s32.totalorder %s1511_s17, 2 }
 0x168   : > { %s1096_s28 = scalar_lea.sflag [#allocation4], %s1095_s24 }
 0x169   : > { %p1274_p4 = pnand %p2334_p3, %p1605_p11 }
 0x16b   : > { %p1275_p10 = pneg %p1274_p4 }
 0x16d   : > { %1486 = dma.done.wait (%p1275_p10), %s1096_s28, 256  }
 0x16e   : > { %1488 = vsyncadd (%p1275_p10), %s1096_s28, 4294967040  ;;  %s22_s17 = sadd.s32 1, %s1511_s17   ;;  %s2335_s29 = sld [smem:[#allocation12_spill]] }
 0x16f   : > { %p19_p13 = scmp.ge.s32.totalorder %s22_s17, 4   ;;  %s2336_s14 = sld [smem:[#allocation14_spill]] }
 0x170   : > { %s2337_s25 = sld [smem:[#allocation13_spill]]  ;;  %s2338_s12 = smov %s1495_s13 }
 0x171   : > { %s2340_s15 = smov %s1507_s16 }
 0x172   :  { %21 = sbr.rel (!%p19_p13) target bundleno = 10 (0xa), region = 117 }
 0x174   : > { %s2339_s13 = smov %s2335_s29 }
 0x176   : > { %s2341_s16 = smov %s2337_s25 }
 0x177   :  { %1101 = vsyncpa [#allocation3], 1 }
 0x178   :  { %1103 = vsyncpa [#allocation3 + $0x1], 1 }
 0x179   :  { %1104 = vsyncpa [#allocation6], 1 }
 0x17a   :  { %1106 = vsyncpa [#allocation6 + $0x1], 1 }
 0x17b   :  { %1107 = vsyncpa [#allocation4], 1 }
 0x17c   :  { %1109 = vsyncpa [#allocation4 + $0x1], 1 }

</bundles_post_ra>
